<compile_context>
chip_gen: v6e
topology: v6e:2x2x1
jax: 0.10.0
libtpu: 0.0.40
codegen_flags: <defaults>
</compile_context>

<pallas_src>
import jax
import jax.numpy as jnp
from jax.experimental import pallas as pl
from jax.experimental.pallas import tpu as pltpu


def _text_encoder_kernel(x_ref, w1_ref, b1_ref, w2_ref, b2_ref, o_ref):
    # Layer 1: (tb, D) @ (D, D) -> (tb, D), f32 accumulation on the MXU.
    h = jnp.dot(x_ref[...], w1_ref[...], preferred_element_type=jnp.float32)
    h = jnp.maximum(h + b1_ref[...], 0.0).astype(jnp.bfloat16)
    # Layer 2: (tb, D) @ (D, C*D) -> (tb, C*D). Columns of w2/b2 are pre-permuted
    # so this tile is already the flattened (C, D) layout of the final output.
    y = jnp.dot(h, w2_ref[...], preferred_element_type=jnp.float32)
    y = jnp.maximum(y + b2_ref[...], 0.0)
    o_ref[...] = y.astype(o_ref.dtype)


def _pick_batch_tile(B):
    # Big tiles keep the MXU fed (>=128 rows) while keeping >=2 grid steps so
    # the "parallel" batch axis shards across the 2 TensorCores on v7x.
    # Capped at 256 so the f32 bias+ReLU+store epilogue stays modest on v5e.
    for cand in (256, 128, 64, 32, 16, 8):
        if B % cand == 0 and B // cand >= 2:
            return cand
    return B  # tiny / odd batch: single grid step covering the whole batch


def text_encoder_forward(txt, txt_mask, params, *, concept_nums=3, tb=None):
    """Faithful TextEncoder.forward. Returns None if txt or txt_mask is None."""
    if txt is None or txt_mask is None:
        return None

    B, D = txt.shape
    C = concept_nums
    CD = C * D
    if tb is None:
        tb = _pick_batch_tile(B)
    assert B % tb == 0, f"batch {B} must be divisible by tile {tb}"

    # ---- one-time parameter prep (outside the hot kernel) -------------------
    # Permute layer-2 output columns:  y_perm[:, c*D + d] == y[:, d*C + c],
    # which is exactly stack(split(y, C, -1), 1).permute(0, 2, 1) flattened.
    w2p = params["w2"].reshape(D, D, C).transpose(0, 2, 1).reshape(D, CD)
    b2p = params["b2"].reshape(1, D, C).transpose(0, 2, 1).reshape(1, CD)

    x_bf = txt.astype(jnp.bfloat16)           # halves activation DMA bytes
    w1 = params["w1"].astype(jnp.bfloat16)    # bf16 operands -> bf16 MXU path
    w2p = w2p.astype(jnp.bfloat16)
    b1 = params["b1"].astype(jnp.float32)     # biases stay f32 for the epilogue
    b2p = b2p.astype(jnp.float32)

    grid = (B // tb,)

    def pinned(shape):
        # Whole array resident in VMEM, same block at every grid step.
        return pl.BlockSpec(shape, lambda i: tuple(0 for _ in shape))

    cost = pl.CostEstimate(
        flops=2 * B * (D * D + D * CD),
        transcendentals=0,
        bytes_accessed=(x_bf.size * 2 + w1.size * 2 + w2p.size * 2
                        + b1.size * 4 + b2p.size * 4 + B * CD * 4),
    )

    out_flat = pl.pallas_call(
        _text_encoder_kernel,
        out_shape=jax.ShapeDtypeStruct((B, CD), jnp.float32),
        grid_spec=pltpu.PrefetchScalarGridSpec(
            num_scalar_prefetch=0,
            grid=grid,
            in_specs=[
                pl.BlockSpec((tb, D), lambda i: (i, 0)),   # txt batch tile
                pinned((D, D)), pinned((1, D)),            # layer-1 W, b
                pinned((D, CD)), pinned((1, CD)),          # layer-2 W, b (permuted)
            ],
            out_specs=pl.BlockSpec((tb, CD), lambda i: (i, 0)),
        ),
        compiler_params=pltpu.CompilerParams(
            dimension_semantics=("parallel",),
        ),
        cost_estimate=cost,
    )(x_bf, w1, b1, w2p, b2p)

    # Free reshape: out_flat[b, c*D + d] -> out[b, c, d].
    return out_flat.reshape(B, C, D)


def init_params(key, d_model, concept_nums):
    """torch.nn.Linear-style init; weights stored as (in_features, out_features)."""
    dims = [(d_model, d_model), (d_model, concept_nums * d_model)]
    params = {}
    keys = jax.random.split(key, 2 * len(dims))
    for idx, (fan_in, fan_out) in enumerate(dims):
        bound = 1.0 / (fan_in ** 0.5)
        params[f"w{idx + 1}"] = jax.random.uniform(
            keys[2 * idx], (fan_in, fan_out),
            minval=-bound, maxval=bound, dtype=jnp.float32)
        params[f"b{idx + 1}"] = jax.random.uniform(
            keys[2 * idx + 1], (1, fan_out),
            minval=-bound, maxval=bound, dtype=jnp.float32)
    return params


def text_encoder_reference(txt, params, concept_nums):
    """Pure-JAX transcription of the PyTorch forward (original weight layout,
    explicit split/stack/permute), using the same bf16-operand / f32-accum math."""
    h = jnp.dot(txt.astype(jnp.bfloat16), params["w1"].astype(jnp.bfloat16),
                preferred_element_type=jnp.float32) + params["b1"]
    h = jnp.maximum(h, 0.0)
    y = jnp.dot(h.astype(jnp.bfloat16), params["w2"].astype(jnp.bfloat16),
                preferred_element_type=jnp.float32) + params["b2"]
    y = jnp.maximum(y, 0.0)
    B, CD = y.shape
    D = CD // concept_nums
    # torch.stack(torch.split(y, C, -1), 1) -> (B, D, C); permute(0,2,1) -> (B, C, D)
    return y.reshape(B, D, concept_nums).transpose(0, 2, 1)


if __name__ == "__main__":
    key = jax.random.PRNGKey(0)
    k_param, k_x = jax.random.split(key)

    D_MODEL = 256    # d_model
    CONCEPTS = 3     # concept_nums (module default)
    B = 256          # batch of sentence embeddings -> tb=128, grid=(2,)

    params = init_params(k_param, D_MODEL, CONCEPTS)
    txt = jax.random.normal(k_x, (B, D_MODEL), dtype=jnp.float32)
    txt_mask = jnp.ones((B,), dtype=jnp.float32)   # only None-checked by forward

    out = text_encoder_forward(txt, txt_mask, params, concept_nums=CONCEPTS)
    out = jax.block_until_ready(out)

    ref = text_encoder_reference(txt, params, CONCEPTS)
    assert out.shape == (B, CONCEPTS, D_MODEL)
    assert jnp.allclose(out, ref, atol=2e-2, rtol=2e-2), "mismatch vs reference"

    # None-path parity with the PyTorch module.
    assert text_encoder_forward(None, None, params, concept_nums=CONCEPTS) is None

    print("KERNEL_OK")
</pallas_src>

<mosaic_0001>
module attributes {stable_mosaic.version = 11 : i64} {
  func.func @_text_encoder_kernel(%arg0: i32, %arg1: memref<128x256xbf16, #tpu.memory_space<vmem>>, %arg2: memref<256x256xbf16, #tpu.memory_space<vmem>>, %arg3: memref<1x256xf32, #tpu.memory_space<vmem>>, %arg4: memref<256x768xbf16, #tpu.memory_space<vmem>>, %arg5: memref<1x768xf32, #tpu.memory_space<vmem>>, %arg6: memref<128x768xf32, #tpu.memory_space<vmem>>) attributes {dimension_semantics = [#tpu.dimension_semantics<parallel>], iteration_bounds = array<i64: 2>, scalar_prefetch = 0 : i64, scratch_operands = 0 : i64, tpu.core_type = #tpu.core_type<tc>, window_params = [{transform_indices = @transform_0, window_bounds = array<i64: 128, 256>}, {pipeline_mode = #tpu.pipeline_mode<synchronous>, transform_indices = @transform_1, window_bounds = array<i64: 256, 256>}, {pipeline_mode = #tpu.pipeline_mode<synchronous>, transform_indices = @transform_2, window_bounds = array<i64: 1, 256>}, {pipeline_mode = #tpu.pipeline_mode<synchronous>, transform_indices = @transform_3, window_bounds = array<i64: 256, 768>}, {pipeline_mode = #tpu.pipeline_mode<synchronous>, transform_indices = @transform_4, window_bounds = array<i64: 1, 768>}, {transform_indices = @transform_5, window_bounds = array<i64: 128, 768>}]} {
    %c0 = arith.constant 0 : index
    %c0_0 = arith.constant 0 : index
    %0 = vector.load %arg1[%c0, %c0_0] : memref<128x256xbf16, #tpu.memory_space<vmem>>, vector<128x256xbf16>
    %c0_1 = arith.constant 0 : index
    %c0_2 = arith.constant 0 : index
    %1 = vector.load %arg2[%c0_1, %c0_2] : memref<256x256xbf16, #tpu.memory_space<vmem>>, vector<256x256xbf16>
    %cst = arith.constant dense<0.000000e+00> : vector<128x256xf32>
    %2 = tpu.matmul %0, %1, %cst {dimension_numbers = #tpu.dot_dimension_numbers<[1], [0], [0], [1], [0, 0, 1, 1], [], []>} : vector<128x256xbf16>, vector<256x256xbf16>, vector<128x256xf32> -> vector<128x256xf32>
    %c0_3 = arith.constant 0 : index
    %c0_4 = arith.constant 0 : index
    %3 = vector.load %arg3[%c0_3, %c0_4] : memref<1x256xf32, #tpu.memory_space<vmem>>, vector<1x256xf32>
    %4 = vector.broadcast %3 : vector<1x256xf32> to vector<128x256xf32>
    %5 = arith.addf %2, %4 : vector<128x256xf32>
    %cst_5 = arith.constant 0.000000e+00 : f32
    %6 = vector.broadcast %cst_5 : f32 to vector<128x256xf32>
    %7 = arith.maximumf %5, %6 : vector<128x256xf32>
    %8 = arith.truncf %7 : vector<128x256xf32> to vector<128x256xbf16>
    %c0_6 = arith.constant 0 : index
    %c0_7 = arith.constant 0 : index
    %9 = vector.load %arg4[%c0_6, %c0_7] : memref<256x768xbf16, #tpu.memory_space<vmem>>, vector<256x768xbf16>
    %cst_8 = arith.constant dense<0.000000e+00> : vector<128x768xf32>
    %10 = tpu.matmul %8, %9, %cst_8 {dimension_numbers = #tpu.dot_dimension_numbers<[1], [0], [0], [1], [0, 0, 1, 1], [], []>} : vector<128x256xbf16>, vector<256x768xbf16>, vector<128x768xf32> -> vector<128x768xf32>
    %c0_9 = arith.constant 0 : index
    %c0_10 = arith.constant 0 : index
    %11 = vector.load %arg5[%c0_9, %c0_10] : memref<1x768xf32, #tpu.memory_space<vmem>>, vector<1x768xf32>
    %12 = vector.broadcast %11 : vector<1x768xf32> to vector<128x768xf32>
    %13 = arith.addf %10, %12 : vector<128x768xf32>
    %cst_11 = arith.constant 0.000000e+00 : f32
    %14 = vector.broadcast %cst_11 : f32 to vector<128x768xf32>
    %15 = arith.maximumf %13, %14 : vector<128x768xf32>
    %c0_12 = arith.constant 0 : index
    %c0_13 = arith.constant 0 : index
    %16 = vector.load %arg6[%c0_12, %c0_13] : memref<128x768xf32, #tpu.memory_space<vmem>>, vector<128x768xf32>
    tpu.vector_store %arg6[%c0_12, %c0_13], %15 {strides = array<i32>} : memref<128x768xf32, #tpu.memory_space<vmem>>, vector<128x768xf32>,
    return
  }
  func.func @transform_0(%arg0: i32) -> (i32, i32) {
    %c0_i32 = arith.constant 0 : i32
    %c0_i32_0 = arith.constant 0 : i32
    return %arg0, %c0_i32 : i32, i32
  }
  func.func @transform_1(%arg0: i32) -> (i32, i32) {
    %c0_i32 = arith.constant 0 : i32
    %c0_i32_0 = arith.constant 0 : i32
    %c0_i32_1 = arith.constant 0 : i32
    return %c0_i32, %c0_i32_0 : i32, i32
  }
  func.func @transform_2(%arg0: i32) -> (i32, i32) {
    %c0_i32 = arith.constant 0 : i32
    %c0_i32_0 = arith.constant 0 : i32
    %c0_i32_1 = arith.constant 0 : i32
    return %c0_i32, %c0_i32_0 : i32, i32
  }
  func.func @transform_3(%arg0: i32) -> (i32, i32) {
    %c0_i32 = arith.constant 0 : i32
    %c0_i32_0 = arith.constant 0 : i32
    %c0_i32_1 = arith.constant 0 : i32
    return %c0_i32, %c0_i32_0 : i32, i32
  }
  func.func @transform_4(%arg0: i32) -> (i32, i32) {
    %c0_i32 = arith.constant 0 : i32
    %c0_i32_0 = arith.constant 0 : i32
    %c0_i32_1 = arith.constant 0 : i32
    return %c0_i32, %c0_i32_0 : i32, i32
  }
  func.func @transform_5(%arg0: i32) -> (i32, i32) {
    %c0_i32 = arith.constant 0 : i32
    %c0_i32_0 = arith.constant 0 : i32
    return %arg0, %c0_i32 : i32, i32
  }
}

</mosaic_0001>

<bundles_post_ra>
// kernel: tpu_custom_call.1
= control target key start
LH: loop header
LB: loop body
LE: loop exit
PB: predicated region body
PF: predicated region fallthrough
CT: control target
= control target key end

     0   :  { %10 = vsyncpa [#allocation3], 0  ;;  %s3248_s0 = inlined_call_operand.hbm [shape: bf16[256,256], index: 0, kind: input, shape index: {}]   ;;  %s3249_s1 = inlined_call_operand.hbm [shape: bf16[256,256], index: 1, kind: input, shape index: {}]   ;;  %s3250_s2 = inlined_call_operand.hbm [shape: f32[1,256], index: 2, kind: input, shape index: {}]   ;;  %s3251_s3 = inlined_call_operand.hbm [shape: bf16[256,768], index: 3, kind: input, shape index: {}]   ;;  %s3252_s4 = inlined_call_operand.vmem [shape: f32[1,768], index: 4, kind: input, shape index: {}]   ;;  %s3253_s5 = inlined_call_operand.hbm [shape: f32[256,768], index: 5, kind: output, shape index: {}]  }
   0x1   :  { %12 = vsyncpa [#allocation3 + $0x1], 0 }
   0x2   :  { %13 = vsyncpa [#allocation6], 0 }
   0x3   :  { %14 = vsyncpa [#allocation9], 0 }
   0x4   :  { %15 = vsyncpa [#allocation4], 0 }
   0x5   :  { %17 = vsyncpa [#allocation4 + $0x1], 0  ;;  %s2693_s18 = smov 0   ;;  %s2695_s19 = smov 0  }
   0x6   :  { %s2697_s20 = smov 0   ;;  %s2699_s21 = smov 0  }
   0x7 LB: > { %s2714_s22 = sadd.s32 4294967295, %s2650_s21   ;;  %s2005_s23 = sadd.s32 4294967294, %s2650_s21   ;;  %s2650_s21 = sphi %s2699_s21, %s3279_s21   ;;  %s2646_s20 = sphi %s2697_s20, %s3278_s20   ;;  %s2642_s19 = sphi %s2695_s19, %s3277_s19   ;;  %s2638_s18 = sphi %s2693_s18, %s3276_s18  }
   0x8   : > { %p43_p0 = scmp.ne.s32.totalorder %s2642_s19, %s2638_s18  ;;  %p3254_p1 = scmp.eq.s32.totalorder %s2714_s22, 0 }
   0x9   : > { %p157_p3 = scmp.eq.s32.totalorder %s2005_s23, 1  ;;  %p2006_p5 = scmp.ge.s32.totalorder %s2650_s21, 1 }
   0xa   : > { %p2723_p4 = por %p3254_p1, %p43_p0  ;;  %p164_p7 = scmp.lt.s32.totalorder %s2650_s21, 3 }
   0xb   : > { %p2728_p6 = por %p157_p3, %p43_p0  ;;  %s2652_s27 = smov [#allocation5]  }
   0xc   : > { %s3259_s24 = scalar_select %p2723_p4, 1, 0 }
   0xd   : > { %s3260_s25 = scalar_select %p2728_p6, 1, 0 }
   0xe   : > { %p2733_p8 = pnand %p2006_p5, %p164_p7  ;;  %s176_s28 = sshll.u32 %s2652_s27, 4  ;;  %s177_s28 = int_to_ptr.vmem [resolvable:$true] %s176_s28 }
   0xf   : > { %s2653_s30 = smov [#allocation7]   ;;  %s2654_s7 = smov [#allocation8]  }
  0x10   : > { %s3261_s26 = scalar_select %p2733_p8, 1, 0 }
  0x11   : > { %p2189_p9 = pneg %p2733_p8  ;;  %s190_s6 = sshll.u32 %s2653_s30, 4  ;;  %s191_s6 = int_to_ptr.vmem [resolvable:$true] %s190_s6 }
  0x12   : > { %s200_s8 = sshll.u32 %s2654_s7, 4  ;;  %s2483_s9 = scalar_lea.vmem %s177_s28, 4096  ;;  %s201_s8 = int_to_ptr.vmem [resolvable:$true] %s200_s8 }
  0x13   : > { %p2742_p11 = pnand %p2189_p9, %p3254_p1  ;;  %p2484_p13 = scmp.ne.s32.totalorder %s177_s28, %s2483_s9 }
  0x14   : > { %p2491_p5 = scmp.lt.s32.totalorder %s177_s28, %s177_s28  ;;  %p2492_p7 = scmp.lt.s32.totalorder %s2483_s9, %s2483_s9 }
  0x15   : > { %p2474_p12 = pneg %p2742_p11 }
  0x16   : > { %p2493_p9 = por %p2492_p7, %p2491_p5 }
  0x17   : > { %p2486_p0 = pnand %p2484_p13, %p2474_p12 }
  0x19   : > { %p2487_p3 = pneg %p2486_p0 }
  0x1b   : > { %p2494_p10 = pnand %p2493_p9, %p2487_p3 }
  0x1d   : > { %2497 = shalt.err (!%p2494_p10)
}
  0x1e   : > { %s3256_s10 = smov 128   ;;  %s2656_s11 = smov 8  }
  0x1f   : > { %2192 = dma.hbm_to_vmem [thread:$0]  (!%p2742_p11), %s3249_s1, 4096, %s177_s28, [#allocation6], %s3256_s10, %s3256_s10, %s2656_s11  }
  0x20   : > { %s2509_s14 = scalar_lea.vmem %s191_s6, 32  ;;  %p2517_p3 = scmp.lt.s32.totalorder %s191_s6, %s191_s6 }
  0x21   : > { %p2510_p13 = scmp.ne.s32.totalorder %s191_s6, %s2509_s14  ;;  %p2518_p10 = scmp.lt.s32.totalorder %s2509_s14, %s2509_s14 }
  0x23   : > { %p2512_p0 = pnand %p2510_p13, %p2474_p12  ;;  %p2519_p7 = por %p2518_p10, %p2517_p3 }
  0x25   : > { %p2513_p5 = pneg %p2512_p0 }
  0x27   : > { %p2520_p9 = pnand %p2519_p7, %p2513_p5 }
  0x29   : > { %2523 = shalt.err (!%p2520_p9)
}
  0x2a   : > { %2195 = dma.hbm_to_vmem [thread:$0]  (!%p2742_p11), %s3250_s2, 32, %s191_s6, [#allocation6]  }
  0x2b   : > { %s2535_s17 = scalar_lea.vmem %s201_s8, 12288  ;;  %p2543_p0 = scmp.lt.s32.totalorder %s201_s8, %s201_s8 }
  0x2c   : > { %p2536_p1 = scmp.ne.s32.totalorder %s201_s8, %s2535_s17  ;;  %p2544_p6 = scmp.lt.s32.totalorder %s2535_s17, %s2535_s17 }
  0x2e   : > { %p2538_p2 = pnand %p2536_p1, %p2474_p12  ;;  %p2545_p4 = por %p2544_p6, %p2543_p0 }
  0x30   : > { %p2539_p13 = pneg %p2538_p2 }
  0x32   : > { %p2546_p3 = pnand %p2545_p4, %p2539_p13 }
  0x34   : > { %2549 = shalt.err (!%p2546_p3)
}
  0x35   : > { %s2657_s23 = smov 384   ;;  %s2658_s27 = smov 24  }
  0x36   : > { %2198 = dma.hbm_to_vmem [thread:$0]  (!%p2742_p11), %s3251_s3, 12288, %s201_s8, [#allocation9], %s2657_s23, %s2657_s23, %s2658_s27  }
  0x37   : > { %s2776_s6 = sadd.s32 1, %s2650_s21   ;;  %s30_s9 = sadd.s32 1, %s2646_s20 }
  0x38   : > { %s27_s7 = ssub.s32 %s2650_s21, %s2776_s6  ;;  %p37_p2 = scmp.ne.s32.totalorder %s2646_s20, %s2642_s19 }
  0x39   : > { %p28_p1 = scmp.eq.s32.totalorder %s27_s7, 0  ;;  %p38_p4 = scmp.eq.s32.totalorder %s2650_s21, 0 }
  0x3a   : > { %p2210_p6 = scmp.lt.s32.totalorder %s2650_s21, 2  ;;  %p3263_p5 = scmp.eq.s32.totalorder %s2714_s22, 1 }
  0x3b   : > { %s2786_s12 = scalar_select %p28_p1, %s2646_s20, %s30_s9  }
  0x3c   : > { %p39_p12 = por %p38_p4, %p37_p2  ;;  %p2790_p10 = por %p3263_p5, %p37_p2 }
  0x3d   : > { %s217_s29 = sand.u32 1, %s2646_s20   ;;  %s2170_s14 = sshll.u32 %s2650_s21, 11 }
  0x3e   : > { %s3264_s13 = scalar_select %p2790_p10, 1, 0 }
  0x3f   : > { %s2011_s8 = sshll.u32 %s217_s29, 7  ;;  %s2799_s17 = scalar_lea.hbm %s3248_s0, %s2170_s14 }
  0x40   : > { %s221_s23 = scalar_lea.vmem [#allocation2], %s2011_s8  ;;  %p2801_p11 = pnand %p2210_p6, %p39_p12 }
  0x41   : > { %s229_s27 = sshll.u32 %s221_s23, 4  ;;  %s2807_s30 = scalar_lea.sflag [#allocation3], %s217_s29  ;;  %s2805_s27 = int_to_ptr.vmem [resolvable:$true] %s229_s27 }
  0x42   : > { %s2550_s7 = scalar_lea.hbm %s2799_s17, 2048  ;;  %p2552_p9 = pneg %p2801_p11 }
  0x43   : > { %p2551_p7 = scmp.ne.s32.totalorder %s2799_s17, %s2550_s7  ;;  %s2555_s8 = scalar_lea.hbm %s3248_s0, 4096 }
  0x44   : > { %p2556_p3 = scmp.lt.s32.totalorder %s2799_s17, %s3248_s0  ;;  %p2557_p1 = scmp.lt.s32.totalorder %s2555_s8, %s2550_s7 }
  0x45   : > { %p2553_p13 = pnand %p2552_p9, %p2551_p7 }
  0x46   : > { %p2558_p2 = por %p2557_p1, %p2556_p3 }
  0x47   : > { %p2554_p0 = pneg %p2553_p13 }
  0x49   : > { %p2559_p4 = pnand %p2558_p2, %p2554_p0 }
  0x4b   : > { %2562 = shalt.err (!%p2559_p4)
}
  0x4c   : > { %s2563_s29 = scalar_lea.vmem %s2805_s27, 2048  ;;  %s2659_s23 = smov [#allocation2]  }
  0x4d   : > { %p2564_p6 = scmp.ne.s32.totalorder %s2805_s27, %s2563_s29  ;;  %s2568_s10 = sshll.u32 %s2659_s23, 4  ;;  %s2569_s10 = int_to_ptr.vmem [resolvable:$false] %s2568_s10 }
  0x4e   : > { %s2570_s9 = scalar_lea.vmem %s2569_s10, 4096  ;;  %p2571_p7 = scmp.lt.s32.totalorder %s2805_s27, %s2569_s10 }
  0x4f   : > { %p2566_p12 = pnand %p2564_p6, %p2552_p9  ;;  %p2572_p13 = scmp.lt.s32.totalorder %s2570_s9, %s2563_s29 }
  0x51   : > { %p2567_p5 = pneg %p2566_p12  ;;  %p2573_p10 = por %p2572_p13, %p2571_p7 }
  0x53   : > { %p2574_p8 = pnand %p2573_p10, %p2567_p5 }
  0x55   : > { %2577 = shalt.err (!%p2574_p8)
}
  0x56   : > { %s3266_s7 = smov 128   ;;  %p3267_p9 = scmp.ne.s32.totalorder %s3261_s26, 0 }
  0x57   : > { %2202 = dma.hbm_to_vmem [thread:$0]  (!%p2801_p11), %s2799_s17, 2048, %s2805_s27, %s2807_s30, %s3266_s7, %s3266_s7, %s2656_s11  }
  0x58   : > { %241 = sbr.rel (%p3267_p9) target bundleno = 708 (0x2c4), region = 40  ;;  %s2834_s14 = sand.u32 (!%p3267_p9), 1, %s2642_s19  }
  0x59   : > { %s2016_s10 = sshll.u32 (!%p3267_p9), %s2834_s14, 7  ;;  %s244_s8 = scalar_lea.sflag (!%p3267_p9), [#allocation3], %s2834_s14 }
  0x5a   : > { %s2838_s15 = scalar_lea.vmem (!%p3267_p9), [#allocation2], %s2016_s10  ;;  %p3268_p8 = scmp.ne.s32.totalorder (!%p3267_p9), %s3259_s24, 0 }
  0x5d   : > { %2621 = dma.done.wait (%p3268_p8), %s244_s8, 2048  }
  0x5e   : > { %2623 = vsyncadd (%p3268_p8), %s244_s8, 4294965248  ;;  %p3269_p10 = scmp.eq.s32.totalorder %s2714_s22, 0 }
  0x60   : > { %2625 = dma.done.wait (%p3269_p10), [#allocation6], 4128   ;;  %p3270_p11 = pmov %p3269_p10 }
  0x61   : > { %p3271_p0 = pmov %p3269_p10 }
  0x62   : > { %2627 = vsyncadd (%p3270_p11), [#allocation6], 4294963168 }
  0x63   : > { %2629 = dma.done.wait (%p3271_p0), [#allocation9], 12288   ;;  %p3272_p3 = pmov %p3271_p0 }
  0x64   : > { %v2256_v0 = vld [vmem:[#allocation5 + $0x74] ss:$8 sps:$4 sm:$0xff]   ;;  %v2258_v1 = vld [vmem:[#allocation5 + $0x70] ss:$8 sps:$4 sm:$0xff]   ;;  %v2259_v2 = vld [vmem:[#allocation5 + $0x64] ss:$8 sps:$4 sm:$0xff]  }
  0x65   : > { %2631 = vsyncadd (%p3272_p3), [#allocation9], 4294955008  ;;  %588 = vmatprep.subr.bf16.mxu0 %v2256_v0  ;;  %v2261_v3 = vld [vmem:[#allocation5 + $0x60] ss:$8 sps:$4 sm:$0xff]   ;;  %v2262_v4 = vld [vmem:[#allocation5 + $0x54] ss:$8 sps:$4 sm:$0xff]  }
  0x66   : > { %589 = vmatpush1.bf16.msra.mxu0 %v2258_v1  ;;  %v2264_v5 = vld [vmem:[#allocation5 + $0x50] ss:$8 sps:$4 sm:$0xff]   ;;  %v2265_v6 = vld [vmem:[#allocation5 + $0x44] ss:$8 sps:$4 sm:$0xff]   ;;  %v2267_v7 = vld [vmem:[#allocation5 + $0x40] ss:$8 sps:$4 sm:$0xff]  }
  0x67   : > { %590 = vmatprep.subr.bf16.mxu0 %v2259_v2  ;;  %v2268_v8 = vld [vmem:[#allocation5 + $0x34] ss:$8 sps:$4 sm:$0xff]   ;;  %v2270_v9 = vld [vmem:[#allocation5 + $0x30] ss:$8 sps:$4 sm:$0xff]   ;;  %v2271_v10 = vld [vmem:[#allocation5 + $0x24] ss:$8 sps:$4 sm:$0xff]  }
  0x68   : > { %v2273_v11 = vld [vmem:[#allocation5 + $0x20] ss:$8 sps:$4 sm:$0xff]   ;;  %v2274_v12 = vld [vmem:[#allocation5 + $0x14] ss:$8 sps:$4 sm:$0xff]   ;;  %v2306_v13 = vld [vmem:[%s2838_s15 + $0x4] ss:$8 sps:$4 sm:$0xff]  }
  0x69   : > { %v2276_v14 = vld [vmem:[#allocation5 + $0x10] ss:$8 sps:$4 sm:$0xff]   ;;  %v2277_v15 = vld [vmem:[#allocation5 + $0x4] ss:$8 sps:$4 sm:$0xff]   ;;  %620 = vmatprep.mubr.bf16.mxu0 %v2306_v13  ;;  %v2279_v16 = vld [vmem:[#allocation5] ss:$8 sps:$4 sm:$0xff]  }
  0x6a   : > { %591 = vmatpush1.bf16.msra.mxu0 %v2261_v3  ;;  %v2280_v17 = vld [vmem:[#allocation5 + $0xf4] ss:$8 sps:$4 sm:$0xff]   ;;  %v2282_v18 = vld [vmem:[#allocation5 + $0xf0] ss:$8 sps:$4 sm:$0xff]   ;;  %v2283_v19 = vld [vmem:[#allocation5 + $0xe4] ss:$8 sps:$4 sm:$0xff]  }
  0x6b   : > { %592 = vmatprep.subr.bf16.mxu0 %v2262_v4  ;;  %v2328_v20 = vld [vmem:[#allocation8 + $0x154] ss:$24 sps:$4 sm:$0xff]   ;;  %v2330_v21 = vld [vmem:[#allocation8 + $0x150] ss:$24 sps:$4 sm:$0xff]   ;;  %v2334_v23 = vld [vmem:[#allocation8 + $0x124] ss:$24 sps:$4 sm:$0xff]  }
  0x6c   : > { %v2285_v22 = vld [vmem:[#allocation5 + $0xe0] ss:$8 sps:$4 sm:$0xff]   ;;  %1357 = vmatprep.subr.bf16.mxu1 %v2328_v20  ;;  %v2286_v25 = vld [vmem:[#allocation5 + $0xd4] ss:$8 sps:$4 sm:$0xff]   ;;  %v2288_v26 = vld [vmem:[#allocation5 + $0xd0] ss:$8 sps:$4 sm:$0xff]  }
  0x6d   : > { %1358 = vmatpush1.bf16.msra.mxu1 %v2330_v21  ;;  %v2336_v24 = vld [vmem:[#allocation8 + $0x120] ss:$24 sps:$4 sm:$0xff]   ;;  %v2340_v27 = vld [vmem:[#allocation8 + $0xf4] ss:$24 sps:$4 sm:$0xff]   ;;  %v2342_v29 = vld [vmem:[#allocation8 + $0xf0] ss:$24 sps:$4 sm:$0xff]  }
  0x6e   : > { %593 = vmatpush1.bf16.msra.mxu0 %v2264_v5  ;;  %1359 = vmatprep.subr.bf16.mxu1 %v2334_v23  ;;  %v2289_v28 = vld [vmem:[#allocation5 + $0xc4] ss:$8 sps:$4 sm:$0xff]   ;;  %v2291_v31 = vld [vmem:[#allocation5 + $0xc0] ss:$8 sps:$4 sm:$0xff]   ;;  %v2292_v32 = vld [vmem:[#allocation5 + $0xb4] ss:$8 sps:$4 sm:$0xff]  }
  0x6f   : > { %594 = vmatprep.subr.bf16.mxu0 %v2265_v6  ;;  %v2346_v30 = vld [vmem:[#allocation8 + $0xc4] ss:$24 sps:$4 sm:$0xff]   ;;  %v2348_v33 = vld [vmem:[#allocation8 + $0xc0] ss:$24 sps:$4 sm:$0xff]   ;;  %v2352_v34 = vld [vmem:[#allocation8 + $0x94] ss:$24 sps:$4 sm:$0xff]  }
  0x70   : > { %v2294_v35 = vld [vmem:[#allocation5 + $0xb0] ss:$8 sps:$4 sm:$0xff]   ;;  %v2295_v36 = vld [vmem:[#allocation5 + $0xa4] ss:$8 sps:$4 sm:$0xff]   ;;  %v2297_v39 = vld [vmem:[#allocation5 + $0xa0] ss:$8 sps:$4 sm:$0xff]  }
  0x71   : > { %1360 = vmatpush1.bf16.msra.mxu1 %v2336_v24  ;;  %v2354_v37 = vld [vmem:[#allocation8 + $0x90] ss:$24 sps:$4 sm:$0xff]   ;;  %v2358_v38 = vld [vmem:[#allocation8 + $0x64] ss:$24 sps:$4 sm:$0xff]   ;;  %v2360_v41 = vld [vmem:[#allocation8 + $0x60] ss:$24 sps:$4 sm:$0xff]  }
  0x72   : > { %595 = vmatpush1.bf16.msra.mxu0 %v2267_v7  ;;  %1361 = vmatprep.subr.bf16.mxu1 %v2340_v27  ;;  %v2298_v40 = vld [vmem:[#allocation5 + $0x94] ss:$8 sps:$4 sm:$0xff]   ;;  %v2300_v43 = vld [vmem:[#allocation5 + $0x90] ss:$8 sps:$4 sm:$0xff]   ;;  %v2301_v44 = vld [vmem:[#allocation5 + $0x84] ss:$8 sps:$4 sm:$0xff]  }
  0x73   : > { %596 = vmatprep.subr.bf16.mxu0 %v2268_v8  ;;  %v2364_v42 = vld [vmem:[#allocation8 + $0x34] ss:$24 sps:$4 sm:$0xff]   ;;  %v2366_v45 = vld [vmem:[#allocation8 + $0x30] ss:$24 sps:$4 sm:$0xff]   ;;  %v2370_v46 = vld [vmem:[#allocation8 + $0x4] ss:$24 sps:$4 sm:$0xff]  }
  0x74   : > { %v2303_v47 = vld [vmem:[#allocation5 + $0x80] ss:$8 sps:$4 sm:$0xff]   ;;  %v2376_v50 = vld [vmem:[#allocation8 + $0x2d4] ss:$24 sps:$4 sm:$0xff]   ;;  %v2331_v53 = vld [vmem:[#allocation8 + $0x158] ss:$24 sps:$4 sm:$0xff]  }
  0x75   : > { %1362 = vmatpush1.bf16.msra.mxu1 %v2342_v29  ;;  %v2333_v48 = vld [vmem:[#allocation8 + $0x15c] ss:$24 sps:$4 sm:$0xff]   ;;  %v2372_v49 = vld [vmem:[#allocation8] ss:$24 sps:$4 sm:$0xff]   ;;  %v2339_v54 = vld [vmem:[#allocation8 + $0x12c] ss:$24 sps:$4 sm:$0xff]  }
  0x76   : > { %597 = vmatpush1.bf16.msra.mxu0 %v2270_v9  ;;  %1363 = vmatprep.subr.bf16.mxu1 %v2346_v30  ;;  %v2304_v51 = vld [vmem:[%s2838_s15] ss:$8 sps:$4 sm:$0xff]   ;;  %v2307_v52 = vld [vmem:[%s2838_s15 + $0x14] ss:$8 sps:$4 sm:$0xff]   ;;  %v2309_v61 = vld [vmem:[%s2838_s15 + $0x10] ss:$8 sps:$4 sm:$0xff]  }
  0x77   : > { %598 = vmatprep.subr.bf16.mxu0 %v2271_v10  ;;  %v2378_v55 = vld [vmem:[#allocation8 + $0x2d0] ss:$24 sps:$4 sm:$0xff]   ;;  %v2382_v56 = vld [vmem:[#allocation8 + $0x2a4] ss:$24 sps:$4 sm:$0xff]   ;;  %v2384_v59 = vld [vmem:[#allocation8 + $0x2a0] ss:$24 sps:$4 sm:$0xff]  }
  0x78   : > { %v2337_v57 = vld [vmem:[#allocation8 + $0x128] ss:$24 sps:$4 sm:$0xff]   ;;  %v2345_v58 = vld [vmem:[#allocation8 + $0xfc] ss:$24 sps:$4 sm:$0xff]   ;;  %v2343_v63 = vld [vmem:[#allocation8 + $0xf8] ss:$24 sps:$4 sm:$0xff]  }
  0x79   : > { %1364 = vmatpush1.bf16.msra.mxu1 %v2348_v33  ;;  %v2388_v60 = vld [vmem:[#allocation8 + $0x274] ss:$24 sps:$4 sm:$0xff]   ;;  %v2390_v1 = vld [vmem:[#allocation8 + $0x270] ss:$24 sps:$4 sm:$0xff]   ;;  %v2394_v2 = vld [vmem:[#allocation8 + $0x244] ss:$24 sps:$4 sm:$0xff]  }
  0x7a   : > { %599 = vmatpush1.bf16.msra.mxu0 %v2273_v11  ;;  %1365 = vmatprep.subr.bf16.mxu1 %v2352_v34  ;;  %v2310_v62 = vld [vmem:[%s2838_s15 + $0x24] ss:$8 sps:$4 sm:$0xff]   ;;  %v2357_v4 = vld [vmem:[#allocation8 + $0x9c] ss:$24 sps:$4 sm:$0xff]   ;;  %v2355_v9 = vld [vmem:[#allocation8 + $0x98] ss:$24 sps:$4 sm:$0xff]  }
  0x7b   : > { %600 = vmatprep.subr.bf16.mxu0 %v2274_v12  ;;  %v2351_v0 = vld [vmem:[#allocation8 + $0xcc] ss:$24 sps:$4 sm:$0xff]   ;;  %v2349_v3 = vld [vmem:[#allocation8 + $0xc8] ss:$24 sps:$4 sm:$0xff]   ;;  %v2313_v8 = vld [vmem:[%s2838_s15 + $0x34] ss:$8 sps:$4 sm:$0xff]  }
  0x7c   : > { %v2396_v5 = vld [vmem:[#allocation8 + $0x240] ss:$24 sps:$4 sm:$0xff]   ;;  %v2400_v6 = vld [vmem:[#allocation8 + $0x214] ss:$24 sps:$4 sm:$0xff]   ;;  %v2402_v11 = vld [vmem:[#allocation8 + $0x210] ss:$24 sps:$4 sm:$0xff]  }
  0x7d   : > { %1366 = vmatpush1.bf16.msra.mxu1 %v2354_v37  ;;  %v2312_v7 = vld [vmem:[%s2838_s15 + $0x20] ss:$8 sps:$4 sm:$0xff]   ;;  %v2319_v21 = vld [vmem:[%s2838_s15 + $0x54] ss:$8 sps:$4 sm:$0xff]   ;;  %v2322_v27 = vld [vmem:[%s2838_s15 + $0x64] ss:$8 sps:$4 sm:$0xff]  }
  0x7e   : > { %601 = vmatpush1.bf16.msra.mxu0 %v2276_v14  ;;  %1367 = vmatprep.subr.bf16.mxu1 %v2358_v38  ;;  %v2363_v10 = vld [vmem:[#allocation8 + $0x6c] ss:$24 sps:$4 sm:$0xff]   ;;  %v2361_v12 = vld [vmem:[#allocation8 + $0x68] ss:$24 sps:$4 sm:$0xff]   ;;  %v2369_v13 = vld [vmem:[#allocation8 + $0x3c] ss:$24 sps:$4 sm:$0xff]  }
  0x7f   : > { %602 = vmatprep.subr.bf16.mxu0 %v2277_v15  ;;  %v2315_v14 = vld [vmem:[%s2838_s15 + $0x30] ss:$8 sps:$4 sm:$0xff]   ;;  %v2316_v15 = vld [vmem:[%s2838_s15 + $0x44] ss:$8 sps:$4 sm:$0xff]   ;;  %v2318_v20 = vld [vmem:[%s2838_s15 + $0x40] ss:$8 sps:$4 sm:$0xff]  }
  0x80   : > { %v2387_v23 = vld [vmem:[#allocation8 + $0x2ac] ss:$24 sps:$4 sm:$0xff]   ;;  %v2385_v24 = vld [vmem:[#allocation8 + $0x2a8] ss:$24 sps:$4 sm:$0xff]   ;;  %v2325_v33 = vld [vmem:[%s2838_s15 + $0x74] ss:$8 sps:$4 sm:$0xff]  }
  0x81   : > { %1368 = vmatpush1.bf16.msra.mxu1 %v2360_v41  ;;  %v2399_v29 = vld [vmem:[#allocation8 + $0x24c] ss:$24 sps:$4 sm:$0xff]   ;;  %v2397_v30 = vld [vmem:[#allocation8 + $0x248] ss:$24 sps:$4 sm:$0xff]   ;;  %v2403_v34 = vld [vmem:[#allocation8 + $0x218] ss:$24 sps:$4 sm:$0xff]  }
  0x82   : > { %603 = vmatpush1.bf16.msra.mxu0 %v2279_v16  ;;  %1369 = vmatprep.subr.bf16.mxu1 %v2364_v42  ;;  %v2367_v16 = vld [vmem:[#allocation8 + $0x38] ss:$24 sps:$4 sm:$0xff]   ;;  %v2411_v37 = vld [vmem:[#allocation8 + $0x1ec] ss:$24 sps:$4 sm:$0xff]   ;;  %v2417_v41 = vld [vmem:[#allocation8 + $0x1bc] ss:$24 sps:$4 sm:$0xff]  }
  0x83   : > { %604 = vmatprep.subr.bf16.mxu0 %v2280_v17  ;;  %v2375_v17 = vld [vmem:[#allocation8 + $0xc] ss:$24 sps:$4 sm:$0xff]   ;;  %v2408_v38 = vld [vmem:[#allocation8 + $0x1e0] ss:$24 sps:$4 sm:$0xff]   ;;  %v2414_v42 = vld [vmem:[#allocation8 + $0x1b0] ss:$24 sps:$4 sm:$0xff]  }
  0x84   : > { %s2171_s11 = smul.u32 768, %s2834_s14  ;;  %p3273_p2 = scmp.ne.s32.totalorder %s3264_s13, 0 }
  0x85   : > { %1370 = vmatpush1.bf16.msra.mxu1 %v2366_v45  ;;  %v2423_v45 = vld [vmem:[#allocation8 + $0x18c] ss:$24 sps:$4 sm:$0xff]   ;;  %s2172_s27 = smul.u32 12288, %s2714_s22  ;;  %s1889_s22 = scalar_lea.sflag [#allocation4], %s2834_s14 }
  0x86   : > { %605 = vmatpush2.bf16.msra.mxu0 %v2282_v18  ;;  %1371 = vmatprep.subr.bf16.mxu1 %v2370_v46  ;;  %v2373_v18 = vld [vmem:[#allocation8 + $0x8] ss:$24 sps:$4 sm:$0xff]   ;;  %s3000_s17 = scalar_lea.vmem [#allocation10], %s2171_s11  ;;  %s2660_s9 = smov [#allocation10]  }
  0x87   : > { %606 = vmatprep.subr.bf16.mxu0 %v2283_v19  ;;  %v2381_v19 = vld [vmem:[#allocation8 + $0x2dc] ss:$24 sps:$4 sm:$0xff]   ;;  %v2420_v46 = vld [vmem:[#allocation8 + $0x180] ss:$24 sps:$4 sm:$0xff]   ;;  %s1903_s28 = sshll.u32 %s3000_s17, 4  ;;  %s3201_s29 = scalar_lea.hbm %s3253_s5, %s2172_s27  ;;  %s3203_s28 = int_to_ptr.vmem [resolvable:$true] %s1903_s28 }
  0x88   : > { %s2578_s23 = scalar_lea.vmem %s3203_s28, 12288  ;;  %s2582_s7 = sshll.u32 %s2660_s9, 4  ;;  %s2583_s7 = int_to_ptr.vmem [resolvable:$false] %s2582_s7 }
  0x89   : > { %1372 = vmatpush1.bf16.msra.mxu1 %v2372_v49  ;;  %v338_v49 = vlaneseq  ;;  %p2579_p1 = scmp.ne.s32.totalorder %s3203_s28, %s2578_s23  ;;  %s2584_s10 = scalar_lea.vmem %s2583_s7, 24576 }
  0x8a   : > { %607 = vmatpush2.bf16.msra.mxu0 %v2285_v22  ;;  %1373 = vmatprep.subr.bf16.mxu1 %v2376_v50  ;;  %v2379_v22 = vld [vmem:[#allocation8 + $0x2d8] ss:$24 sps:$4 sm:$0xff]   ;;  %p2585_p12 = scmp.lt.s32.totalorder %s3203_s28, %s2583_s7  ;;  %p2586_p5 = scmp.lt.s32.totalorder %s2584_s10, %s2578_s23 }
  0x8b   : > { %608 = vmatprep.subr.bf16.mxu0 %v2286_v25  ;;  %v2393_v25 = vld [vmem:[#allocation8 + $0x27c] ss:$24 sps:$4 sm:$0xff]   ;;  %v2868_v50 = vshrl.u32 %v338_v49, 7  ;;  %p2580_p4 = pnand %p2579_p1, %p3273_p2 }
  0x8c   : > { %p2587_p7 = por %p2586_p5, %p2585_p12 }
  0x8d   : > { %1374 = vmatpush2.bf16.msra.mxu1 %v2378_v55  ;;  %p2581_p6 = pneg %p2580_p4 }
  0x8e   : > { %609 = vmatpush2.bf16.msra.mxu0 %v2288_v26  ;;  %1375 = vmatprep.subr.bf16.mxu1 %v2382_v56  ;;  %v2321_v26 = vld [vmem:[%s2838_s15 + $0x50] ss:$8 sps:$4 sm:$0xff]  }
  0x8f   : > { %610 = vmatprep.subr.bf16.mxu0 %v2289_v28  ;;  %v2391_v28 = vld [vmem:[#allocation8 + $0x278] ss:$24 sps:$4 sm:$0xff]   ;;  %p2588_p13 = pnand %p2587_p7, %p2581_p6 }
  0x91   : > { %1376 = vmatpush2.bf16.msra.mxu1 %v2384_v59 }
  0x92   : > { %611 = vmatpush2.bf16.msra.mxu0 %v2291_v31  ;;  %1377 = vmatprep.subr.bf16.mxu1 %v2388_v60  ;;  %v2405_v31 = vld [vmem:[#allocation8 + $0x21c] ss:$24 sps:$4 sm:$0xff]  }
  0x93   : > { %612 = vmatprep.subr.bf16.mxu0 %v2292_v32  ;;  %v2324_v32 = vld [vmem:[%s2838_s15 + $0x60] ss:$8 sps:$4 sm:$0xff]  }
  0x95   : > { %1378 = vmatpush2.bf16.msra.mxu1 %v2390_v1 }
  0x96   : > { %613 = vmatpush2.bf16.msra.mxu0 %v2294_v35  ;;  %1379 = vmatprep.subr.bf16.mxu1 %v2394_v2  ;;  %v2327_v35 = vld [vmem:[%s2838_s15 + $0x70] ss:$8 sps:$4 sm:$0xff]  }
  0x97   : > { %614 = vmatprep.subr.bf16.mxu0 %v2295_v36  ;;  %v2406_v36 = vld [vmem:[#allocation8 + $0x1e4] ss:$24 sps:$4 sm:$0xff]  }
  0x99   : > { %1380 = vmatpush2.bf16.msra.mxu1 %v2396_v5 }
  0x9a   : > { %615 = vmatpush2.bf16.msra.mxu0 %v2297_v39  ;;  %1381 = vmatprep.subr.bf16.mxu1 %v2400_v6  ;;  %v2409_v39 = vld [vmem:[#allocation8 + $0x1e8] ss:$24 sps:$4 sm:$0xff]  }
  0x9b   : > { %616 = vmatprep.subr.bf16.mxu0 %v2298_v40  ;;  %v2412_v40 = vld [vmem:[#allocation8 + $0x1b4] ss:$24 sps:$4 sm:$0xff]  }
  0x9d   : > { %1382 = vmatpush2.bf16.msra.mxu1 %v2402_v11 }
  0x9e   : > { %617 = vmatpush2.bf16.msra.mxu0 %v2300_v43  ;;  %1383 = vmatprep.subr.bf16.mxu1 %v2406_v36  ;;  %v2415_v43 = vld [vmem:[#allocation8 + $0x1b8] ss:$24 sps:$4 sm:$0xff]  }
  0x9f   : > { %618 = vmatprep.subr.bf16.mxu0 %v2301_v44  ;;  %v2418_v44 = vld [vmem:[#allocation8 + $0x184] ss:$24 sps:$4 sm:$0xff]  }
  0xa1   : > { %1384 = vmatpush2.bf16.msra.mxu1 %v2408_v38 }
  0xa2   : > { %619 = vmatpush2.bf16.msra.mxu0 %v2303_v47  ;;  %1385 = vmatprep.subr.bf16.mxu1 %v2412_v40  ;;  %v2421_v47 = vld [vmem:[#allocation8 + $0x188] ss:$24 sps:$4 sm:$0xff]  }
  0xa3   : > { %1470 = vmatprep.subr.bf16.mxu0 %v2333_v48  ;;  %v2426_v48 = vld [vmem:[#allocation8 + $0x164] ss:$24 sps:$4 sm:$0xff]  }
  0xa5   : > { %621 = vmatmul.mubr.bf16.vlgmr.msra.gmra.mxu0 %v2304_v51  ;;  %1386 = vmatpush2.bf16.msra.mxu1 %v2414_v42  ;;  %v344_v51 = vsub.s32 1, %v2868_v50 }
  0xa6   : > { %630 = vmatprep.mubr.bf16.mxu0 %v2307_v52  ;;  %1471 = vmatpush1.bf16.msra.mxu0 %v2331_v53  ;;  %v340_v52 = vsub.s32 0, %v2868_v50  ;;  %v336_v53 = vld [vmem:[#allocation7] sm:$0x3] }
  0xa7   : > { %1472 = vmatprep.subr.bf16.mxu0 %v2339_v54  ;;  %1387 = vmatprep.subr.bf16.mxu1 %v2418_v44  ;;  %v2874_v55 = vrot.slane %v336_v53, %v344_v51 }
  0xa8   : > { %v2878_v56 = vrot.slane %v336_v53, %v340_v52 }
  0xa9   : > { %1388 = vmatpush2.bf16.msra.mxu1 %v2420_v46  ;;  %v2441_v46 = vld [vmem:[#allocation8 + $0x74] ss:$24 sps:$4 sm:$0xff]  }
  0xaa   : > { %1473 = vmatpush1.bf16.msra.mxu0 %v2337_v57  ;;  %1583 = vmatprep.subr.bf16.mxu1 %v2426_v48 }
  0xab   : > { %1474 = vmatprep.subr.bf16.mxu0 %v2345_v58 }
  0xad   : > { %631 = vmatmul.mubr.bf16.gmra.mxu0 %v2309_v61 }
  0xae   : > { %640 = vmatprep.mubr.bf16.mxu0 %v2310_v62  ;;  %1475 = vmatpush1.bf16.msra.mxu0 %v2343_v63 }
  0xaf   : > { %1476 = vmatprep.subr.bf16.mxu0 %v2351_v0 }
  0xb2   : > { %1477 = vmatpush1.bf16.msra.mxu0 %v2349_v3 }
  0xb3   : > { %1478 = vmatprep.subr.bf16.mxu0 %v2357_v4 }
  0xb5   : > { %641 = vmatmul.mubr.bf16.gmra.mxu0 %v2312_v7  ;;  %v2424_v7 = vld [vmem:[#allocation8 + $0x160] ss:$24 sps:$4 sm:$0xff]  }
  0xb6   : > { %650 = vmatprep.mubr.bf16.mxu0 %v2313_v8  ;;  %1479 = vmatpush1.bf16.msra.mxu0 %v2355_v9 }
  0xb7   : > { %1480 = vmatprep.subr.bf16.mxu0 %v2363_v10  ;;  %v2429_v10 = vld [vmem:[#allocation8 + $0x134] ss:$24 sps:$4 sm:$0xff]  }
  0xba   : > { %1481 = vmatpush1.bf16.msra.mxu0 %v2361_v12 }
  0xbb   : > { %1482 = vmatprep.subr.bf16.mxu0 %v2369_v13 }
  0xbd   : > { %651 = vmatmul.mubr.bf16.gmra.mxu0 %v2315_v14 }
  0xbe   : > { %660 = vmatprep.mubr.bf16.mxu0 %v2316_v15  ;;  %1483 = vmatpush1.bf16.msra.mxu0 %v2367_v16  ;;  %v2427_v16 = vld [vmem:[#allocation8 + $0x130] ss:$24 sps:$4 sm:$0xff]  }
  0xbf   : > { %1484 = vmatprep.subr.bf16.mxu0 %v2375_v17 }
  0xc2   : > { %1485 = vmatpush1.bf16.msra.mxu0 %v2373_v18 }
  0xc3   : > { %1486 = vmatprep.subr.bf16.mxu0 %v2381_v19  ;;  %v2432_v19 = vld [vmem:[#allocation8 + $0x104] ss:$24 sps:$4 sm:$0xff]  }
  0xc5   : > { %661 = vmatmul.mubr.bf16.gmra.mxu0 %v2318_v20 }
  0xc6   : > { %670 = vmatprep.mubr.bf16.mxu0 %v2319_v21  ;;  %1487 = vmatpush2.bf16.msra.mxu0 %v2379_v22 }
  0xc7   : > { %1488 = vmatprep.subr.bf16.mxu0 %v2387_v23 }
  0xca   : > { %1489 = vmatpush2.bf16.msra.mxu0 %v2385_v24 }
  0xcb   : > { %1490 = vmatprep.subr.bf16.mxu0 %v2393_v25  ;;  %v2430_v25 = vld [vmem:[#allocation8 + $0x100] ss:$24 sps:$4 sm:$0xff]  }
  0xcd   : > { %671 = vmatmul.mubr.bf16.gmra.mxu0 %v2321_v26 }
  0xce   : > { %680 = vmatprep.mubr.bf16.mxu0 %v2322_v27  ;;  %1491 = vmatpush2.bf16.msra.mxu0 %v2391_v28  ;;  %v2435_v28 = vld [vmem:[#allocation8 + $0xd4] ss:$24 sps:$4 sm:$0xff]  }
  0xcf   : > { %1492 = vmatprep.subr.bf16.mxu0 %v2399_v29 }
  0xd2   : > { %1493 = vmatpush2.bf16.msra.mxu0 %v2397_v30 }
  0xd3   : > { %1494 = vmatprep.subr.bf16.mxu0 %v2405_v31 }
  0xd5   : > { %681 = vmatmul.mubr.bf16.gmra.mxu0 %v2324_v32 }
  0xd6   : > { %690 = vmatprep.mubr.bf16.mxu0 %v2325_v33  ;;  %1495 = vmatpush2.bf16.msra.mxu0 %v2403_v34  ;;  %v2433_v34 = vld [vmem:[#allocation8 + $0xd0] ss:$24 sps:$4 sm:$0xff]  }
  0xd7   : > { %1496 = vmatprep.subr.bf16.mxu0 %v2411_v37  ;;  %v2438_v37 = vld [vmem:[#allocation8 + $0xa4] ss:$24 sps:$4 sm:$0xff]  }
  0xda   : > { %1497 = vmatpush2.bf16.msra.mxu0 %v2409_v39 }
  0xdb   : > { %1498 = vmatprep.subr.bf16.mxu0 %v2417_v41 }
  0xdd   : > { %691 = vmatmul.mubr.bf16.gmra.mxu0 %v2327_v35 }
  0xde   : > { %1499 = vmatpush2.bf16.msra.mxu0 %v2415_v43  ;;  %v2436_v43 = vld [vmem:[#allocation8 + $0xa0] ss:$24 sps:$4 sm:$0xff]  }
  0xdf   : > { %1500 = vmatprep.subr.bf16.mxu0 %v2423_v45 }
  0xe2   : > { %1501 = vmatpush2.bf16.msra.mxu0 %v2421_v47 }
 0x165   : > { %v622_v54 = vpop.f32.mrf.mxu0 }
 0x166   : > { %v623_v61 = vadd.f32 %v622_v54, %v2878_v56 }
 0x167   : > { %v624_v57 = vpop.f32.mrf.mxu0 }
 0x168   : > { %v625_v59 = vadd.f32 %v624_v57, %v2874_v55  ;;  %v701_v4 = vmax.f32 %v623_v61, 0.0  ;;  %v2439_v57 = vld [vmem:[#allocation8 + $0x70] ss:$24 sps:$4 sm:$0xff]  }
 0x169   : > { %v626_v58 = vpop.f32.mrf.mxu0 }
 0x16a   : > { %v627_v60 = vadd.f32 %v626_v58, %v2878_v56  ;;  %v702_v2 = vmax.f32 %v625_v59, 0.0 }
 0x16b   : > { %v628_v62 = vpop.f32.mrf.mxu0 }
 0x16c   : > { %v629_v63 = vadd.f32 %v628_v62, %v2874_v55  ;;  %v703_v0 = vmax.f32 %v627_v60, 0.0  ;;  %v2444_v60 = vld [vmem:[#allocation8 + $0x44] ss:$24 sps:$4 sm:$0xff]  }
 0x16d   : > { %v632_v1 = vpop.f32.mrf.mxu0 }
 0x16e   : > { %v704_v3 = vmax.f32 %v629_v63, 0.0  ;;  %v2886_v8 = vpack.c.bf16 %v703_v0, %v701_v4  ;;  %v633_v13 = vadd.f32 %v632_v1, %v2878_v56 }
 0x16f   : > { %v634_v5 = vpop.f32.mrf.mxu0 }
 0x170   : > { %v2884_v6 = vpack.c.bf16 %v704_v3, %v702_v2  ;;  %v635_v11 = vadd.f32 %v634_v5, %v2874_v55  ;;  %v705_v22 = vmax.f32 %v633_v13, 0.0  ;;  %v2442_v2 = vld [vmem:[#allocation8 + $0x40] ss:$24 sps:$4 sm:$0xff]   ;;  %v2447_v5 = vld [vmem:[#allocation8 + $0x14] ss:$24 sps:$4 sm:$0xff]  }
 0x171   : > { %v636_v9 = vpop.f32.mrf.mxu0  ;;  %v2445_v13 = vld [vmem:[#allocation8 + $0x10] ss:$24 sps:$4 sm:$0xff]  }
 0x172   : > { %v637_v12 = vadd.f32 %v636_v9, %v2878_v56  ;;  %1389 = vmatprep.mubr.bf16.mxu1 %v2884_v6  ;;  %1502 = vmatprep.mubr.bf16.mxu0 %v2884_v6  ;;  %v706_v20 = vmax.f32 %v635_v11, 0.0 }
 0x173   : > { %v638_v14 = vpop.f32.mrf.mxu0  ;;  %1390 = vmatmul.mubr.bf16.vlgmr.msra.gmra.mxu1 %v2886_v8  ;;  %1503 = vmatmul.mubr.bf16.vlgmr.msra.gmra.mxu0 %v2886_v8 }
 0x174   : > { %v639_v15 = vadd.f32 %v638_v14, %v2874_v55  ;;  %1584 = vmatpush1.bf16.msra.mxu1 %v2424_v7  ;;  %v707_v17 = vmax.f32 %v637_v12, 0.0 }
 0x175   : > { %v642_v18 = vpop.f32.mrf.mxu0  ;;  %1585 = vmatprep.subr.bf16.mxu1 %v2429_v10 }
 0x176   : > { %v708_v21 = vmax.f32 %v639_v15, 0.0  ;;  %v2898_v26 = vpack.c.bf16 %v707_v17, %v705_v22  ;;  %v643_v31 = vadd.f32 %v642_v18, %v2878_v56  ;;  %v2448_v22 = vld [vmem:[#allocation8 + $0x2e0] ss:$24 sps:$4 sm:$0xff]  }
 0x177   : > { %v644_v23 = vpop.f32.mrf.mxu0 }
 0x178   : > { %v2896_v24 = vpack.c.bf16 %v708_v21, %v706_v20  ;;  %1586 = vmatpush1.bf16.msra.mxu1 %v2427_v16  ;;  %v645_v29 = vadd.f32 %v644_v23, %v2874_v55  ;;  %v709_v40 = vmax.f32 %v643_v31, 0.0  ;;  %v2450_v16 = vld [vmem:[#allocation8 + $0x2e4] ss:$24 sps:$4 sm:$0xff]  }
 0x179   : > { %v646_v27 = vpop.f32.mrf.mxu0  ;;  %1587 = vmatprep.subr.bf16.mxu1 %v2432_v19 }
 0x17a   : > { %v647_v30 = vadd.f32 %v646_v27, %v2878_v56  ;;  %1399 = vmatprep.mubr.bf16.mxu1 %v2896_v24  ;;  %1512 = vmatprep.mubr.bf16.mxu0 %v2896_v24  ;;  %v710_v38 = vmax.f32 %v645_v29, 0.0  ;;  %v2453_v27 = vld [vmem:[#allocation8 + $0x2b4] ss:$24 sps:$4 sm:$0xff]  }
 0x17b   : > { %v648_v32 = vpop.f32.mrf.mxu0  ;;  %1400 = vmatmul.mubr.bf16.gmra.mxu1 %v2898_v26  ;;  %1513 = vmatmul.mubr.bf16.gmra.mxu0 %v2898_v26 }
 0x17c   : > { %v649_v33 = vadd.f32 %v648_v32, %v2874_v55  ;;  %1588 = vmatpush1.bf16.msra.mxu1 %v2430_v25  ;;  %v711_v35 = vmax.f32 %v647_v30, 0.0 }
 0x17d   : > { %v652_v36 = vpop.f32.mrf.mxu0  ;;  %1589 = vmatprep.subr.bf16.mxu1 %v2435_v28 }
 0x17e   : > { %v712_v39 = vmax.f32 %v649_v33, 0.0  ;;  %v2910_v44 = vpack.c.bf16 %v711_v35, %v709_v40  ;;  %v653_v49 = vadd.f32 %v652_v36, %v2878_v56  ;;  %v2451_v33 = vld [vmem:[#allocation8 + $0x2b0] ss:$24 sps:$4 sm:$0xff]   ;;  %v2456_v36 = vld [vmem:[#allocation8 + $0x284] ss:$24 sps:$4 sm:$0xff]  }
 0x17f   : > { %v654_v41 = vpop.f32.mrf.mxu0 }
 0x180   : > { %v2908_v42 = vpack.c.bf16 %v712_v39, %v710_v38  ;;  %1590 = vmatpush1.bf16.msra.mxu1 %v2433_v34  ;;  %v655_v47 = vadd.f32 %v654_v41, %v2874_v55  ;;  %v713_v63 = vmax.f32 %v653_v49, 0.0 }
 0x181   : > { %v656_v45 = vpop.f32.mrf.mxu0  ;;  %1591 = vmatprep.subr.bf16.mxu1 %v2438_v37 }
 0x182   : > { %v657_v48 = vadd.f32 %v656_v45, %v2878_v56  ;;  %1409 = vmatprep.mubr.bf16.mxu1 %v2908_v42  ;;  %1522 = vmatprep.mubr.bf16.mxu0 %v2908_v42  ;;  %v714_v61 = vmax.f32 %v655_v47, 0.0  ;;  %v2459_v47 = vld [vmem:[#allocation8 + $0x254] ss:$24 sps:$4 sm:$0xff]  }
 0x183   : > { %v658_v53 = vpop.f32.mrf.mxu0  ;;  %1410 = vmatmul.mubr.bf16.gmra.mxu1 %v2910_v44  ;;  %1523 = vmatmul.mubr.bf16.gmra.mxu0 %v2910_v44 }
 0x184   : > { %v659_v54 = vadd.f32 %v658_v53, %v2874_v55  ;;  %1592 = vmatpush1.bf16.msra.mxu1 %v2436_v43  ;;  %v715_v58 = vmax.f32 %v657_v48, 0.0  ;;  %v2454_v43 = vld [vmem:[#allocation8 + $0x280] ss:$24 sps:$4 sm:$0xff]  }
 0x185   : > { %v662_v59 = vpop.f32.mrf.mxu0  ;;  %1593 = vmatprep.subr.bf16.mxu1 %v2441_v46 }
 0x186   : > { %v716_v62 = vmax.f32 %v659_v54, 0.0  ;;  %v2922_v3 = vpack.c.bf16 %v715_v58, %v713_v63  ;;  %v663_v10 = vadd.f32 %v662_v59, %v2878_v56  ;;  %v2457_v58 = vld [vmem:[#allocation8 + $0x250] ss:$24 sps:$4 sm:$0xff]  }
 0x187   : > { %v664_v0 = vpop.f32.mrf.mxu0 }
 0x188   : > { %v2920_v1 = vpack.c.bf16 %v716_v62, %v714_v61  ;;  %1594 = vmatpush1.bf16.msra.mxu1 %v2439_v57  ;;  %v665_v7 = vadd.f32 %v664_v0, %v2874_v55  ;;  %v717_v19 = vmax.f32 %v663_v10, 0.0  ;;  %v2462_v61 = vld [vmem:[#allocation8 + $0x224] ss:$24 sps:$4 sm:$0xff]   ;;  %v2465_v10 = vld [vmem:[#allocation8 + $0x1f4] ss:$24 sps:$4 sm:$0xff]  }
 0x189   : > { %v666_v4 = vpop.f32.mrf.mxu0  ;;  %1595 = vmatprep.subr.bf16.mxu1 %v2444_v60 }
 0x18a   : > { %v667_v9 = vadd.f32 %v666_v4, %v2878_v56  ;;  %1419 = vmatprep.mubr.bf16.mxu1 %v2920_v1  ;;  %1532 = vmatprep.mubr.bf16.mxu0 %v2920_v1  ;;  %v718_v17 = vmax.f32 %v665_v7, 0.0 }
 0x18b   : > { %v668_v11 = vpop.f32.mrf.mxu0  ;;  %1420 = vmatmul.mubr.bf16.gmra.mxu1 %v2922_v3  ;;  %1533 = vmatmul.mubr.bf16.gmra.mxu0 %v2922_v3 }
 0x18c   : > { %v669_v12 = vadd.f32 %v668_v11, %v2874_v55  ;;  %1596 = vmatpush1.bf16.msra.mxu1 %v2442_v2  ;;  %v719_v14 = vmax.f32 %v667_v9, 0.0 }
 0x18d   : > { %v672_v15 = vpop.f32.mrf.mxu0  ;;  %1597 = vmatprep.subr.bf16.mxu1 %v2447_v5  ;;  %v2460_v5 = vld [vmem:[#allocation8 + $0x220] ss:$24 sps:$4 sm:$0xff]  }
 0x18e   : > { %v720_v18 = vmax.f32 %v669_v12, 0.0  ;;  %v2934_v23 = vpack.c.bf16 %v719_v14, %v717_v19  ;;  %v673_v30 = vadd.f32 %v672_v15, %v2878_v56 }
 0x18f   : > { %v674_v20 = vpop.f32.mrf.mxu0 }
 0x190   : > { %v2932_v21 = vpack.c.bf16 %v720_v18, %v718_v17  ;;  %1598 = vmatpush1.bf16.msra.mxu1 %v2445_v13  ;;  %v675_v28 = vadd.f32 %v674_v20, %v2874_v55  ;;  %v721_v39 = vmax.f32 %v673_v30, 0.0  ;;  %v2468_v18 = vld [vmem:[#allocation8 + $0x1c4] ss:$24 sps:$4 sm:$0xff]  }
 0x191   : > { %v676_v25 = vpop.f32.mrf.mxu0  ;;  %1599 = vmatprep.subr.bf16.mxu1 %v2450_v16  ;;  %v2463_v16 = vld [vmem:[#allocation8 + $0x1f0] ss:$24 sps:$4 sm:$0xff]  }
 0x192   : > { %v677_v29 = vadd.f32 %v676_v25, %v2878_v56  ;;  %1429 = vmatprep.mubr.bf16.mxu1 %v2932_v21  ;;  %1542 = vmatprep.mubr.bf16.mxu0 %v2932_v21  ;;  %v722_v37 = vmax.f32 %v675_v28, 0.0 }
 0x193   : > { %v678_v31 = vpop.f32.mrf.mxu0  ;;  %1430 = vmatmul.mubr.bf16.gmra.mxu1 %v2934_v23  ;;  %1543 = vmatmul.mubr.bf16.gmra.mxu0 %v2934_v23 }
 0x194   : > { %v679_v32 = vadd.f32 %v678_v31, %v2874_v55  ;;  %1600 = vmatpush2.bf16.msra.mxu1 %v2448_v22  ;;  %v723_v34 = vmax.f32 %v677_v29, 0.0  ;;  %v2471_v29 = vld [vmem:[#allocation8 + $0x194] ss:$24 sps:$4 sm:$0xff]  }
 0x195   : > { %v682_v35 = vpop.f32.mrf.mxu0  ;;  %1601 = vmatprep.subr.bf16.mxu1 %v2453_v27  ;;  %v2466_v27 = vld [vmem:[#allocation8 + $0x1c0] ss:$24 sps:$4 sm:$0xff]  }
 0x196   : > { %v724_v38 = vmax.f32 %v679_v32, 0.0  ;;  %v2946_v45 = vpack.c.bf16 %v723_v34, %v721_v39  ;;  %v683_v53 = vadd.f32 %v682_v35, %v2878_v56 }
 0x197   : > { %v684_v40 = vpop.f32.mrf.mxu0 }
 0x198   : > { %v2944_v41 = vpack.c.bf16 %v724_v38, %v722_v37  ;;  %1602 = vmatpush2.bf16.msra.mxu1 %v2451_v33  ;;  %v685_v48 = vadd.f32 %v684_v40, %v2874_v55  ;;  %v725_v0 = vmax.f32 %v683_v53, 0.0 }
 0x199   : > { %v686_v46 = vpop.f32.mrf.mxu0  ;;  %1603 = vmatprep.subr.bf16.mxu1 %v2456_v36 }
 0x19a   : > { %v687_v49 = vadd.f32 %v686_v46, %v2878_v56  ;;  %1439 = vmatprep.mubr.bf16.mxu1 %v2944_v41  ;;  %1552 = vmatprep.mubr.bf16.mxu0 %v2944_v41  ;;  %v726_v62 = vmax.f32 %v685_v48, 0.0 }
 0x19b   : > { %v688_v54 = vpop.f32.mrf.mxu0  ;;  %1440 = vmatmul.mubr.bf16.gmra.mxu1 %v2946_v45  ;;  %1553 = vmatmul.mubr.bf16.gmra.mxu0 %v2946_v45 }
 0x19c   : > { %v689_v57 = vadd.f32 %v688_v54, %v2874_v55  ;;  %1604 = vmatpush2.bf16.msra.mxu1 %v2454_v43  ;;  %v727_v59 = vmax.f32 %v687_v49, 0.0 }
 0x19d   : > { %v692_v60 = vpop.f32.mrf.mxu0  ;;  %1605 = vmatprep.subr.bf16.mxu1 %v2459_v47 }
 0x19e   : > { %v728_v63 = vmax.f32 %v689_v57, 0.0  ;;  %v745_v7 = vpack.c.bf16 %v727_v59, %v725_v0  ;;  %v693_v13 = vadd.f32 %v692_v60, %v2878_v56 }
 0x19f   : > { %v694_v2 = vpop.f32.mrf.mxu0 }
 0x1a0   : > { %v746_v4 = vpack.c.bf16 %v728_v63, %v726_v62  ;;  %1606 = vmatpush2.bf16.msra.mxu1 %v2457_v58  ;;  %v695_v11 = vadd.f32 %v694_v2, %v2874_v55  ;;  %v729_v22 = vmax.f32 %v693_v13, 0.0 }
 0x1a1   : > { %v696_v9 = vpop.f32.mrf.mxu0  ;;  %1607 = vmatprep.subr.bf16.mxu1 %v2462_v61 }
 0x1a2   : > { %v697_v12 = vadd.f32 %v696_v9, %v2878_v56  ;;  %1449 = vmatprep.mubr.bf16.mxu1 %v746_v4  ;;  %1562 = vmatprep.mubr.bf16.mxu0 %v746_v4  ;;  %v730_v19 = vmax.f32 %v695_v11, 0.0  ;;  %v857_v56 = vsub.s32 2, %v2868_v50 }
 0x1a3   : > { %v698_v14 = vpop.f32.mrf.mxu0  ;;  %1450 = vmatmul.mubr.bf16.gmra.mxu1 %v745_v7  ;;  %1563 = vmatmul.mubr.bf16.gmra.mxu0 %v745_v7 }
 0x1a4   : > { %v699_v15 = vadd.f32 %v698_v14, %v2874_v55  ;;  %1608 = vmatpush2.bf16.msra.mxu1 %v2460_v5  ;;  %v731_v17 = vmax.f32 %v697_v12, 0.0  ;;  %v2469_v55 = vld [vmem:[#allocation8 + $0x190] ss:$24 sps:$4 sm:$0xff]  }
 0x1a5   : > { %1609 = vmatprep.subr.bf16.mxu1 %v2465_v10 }
 0x1a6   : > { %v732_v20 = vmax.f32 %v699_v15, 0.0  ;;  %v747_v28 = vpack.c.bf16 %v731_v17, %v729_v22 }
 0x1a8   : > { %v748_v25 = vpack.c.bf16 %v732_v20, %v730_v19  ;;  %1610 = vmatpush2.bf16.msra.mxu1 %v2463_v16 }
 0x1a9   : > { %1611 = vmatprep.subr.bf16.mxu1 %v2468_v18 }
 0x1aa   : > { %1459 = vmatprep.mubr.bf16.mxu1 %v748_v25  ;;  %1572 = vmatprep.mubr.bf16.mxu0 %v748_v25 }
 0x1ab   : > { %1460 = vmatmul.mubr.bf16.gmra.mxu1 %v747_v28  ;;  %1573 = vmatmul.mubr.bf16.gmra.mxu0 %v747_v28 }
 0x1ac   : > { %1612 = vmatpush2.bf16.msra.mxu1 %v2466_v27  ;;  %1615 = vmatprep.mubr.bf16.mxu1 %v2884_v6  ;;  %v2976_v6 = vld [vmem:[%s3252_s4] sm:$0x3f] }
 0x1ad   : > { %1613 = vmatprep.subr.bf16.mxu1 %v2471_v29 }
 0x1b0   : > { %1614 = vmatpush2.bf16.msra.mxu1 %v2469_v55 }
 0x1b3   : > { %1616 = vmatmul.mubr.bf16.vlgmr.msra.gmra.mxu1 %v2886_v8  ;;  %v861_v8 = vsub.s32 3, %v2868_v50 }
 0x1b4   : > { %1625 = vmatprep.mubr.bf16.mxu1 %v2896_v24  ;;  %v2982_v24 = vrot.slane %v2976_v6, %v340_v52 }
 0x1bb   : > { %1626 = vmatmul.mubr.bf16.gmra.mxu1 %v2898_v26  ;;  %v2985_v26 = vrot.slane %v2976_v6, %v857_v56 }
 0x1bc   : > { %1635 = vmatprep.mubr.bf16.mxu1 %v2908_v42  ;;  %v2991_v42 = vrot.slane %v2976_v6, %v344_v51 }
 0x1c3   : > { %1636 = vmatmul.mubr.bf16.gmra.mxu1 %v2910_v44  ;;  %v2994_v44 = vrot.slane %v2976_v6, %v861_v8 }
 0x1c4   : > { %1645 = vmatprep.mubr.bf16.mxu1 %v2920_v1 }
 0x1cb   : > { %1646 = vmatmul.mubr.bf16.gmra.mxu1 %v2922_v3 }
 0x1cc   : > { %1655 = vmatprep.mubr.bf16.mxu1 %v2932_v21 }
 0x1d3   : > { %1656 = vmatmul.mubr.bf16.gmra.mxu1 %v2934_v23 }
 0x1d4   : > { %1665 = vmatprep.mubr.bf16.mxu1 %v2944_v41 }
 0x1db   : > { %1666 = vmatmul.mubr.bf16.gmra.mxu1 %v2946_v45 }
 0x1dc   : > { %1675 = vmatprep.mubr.bf16.mxu1 %v746_v4 }
 0x1e3   : > { %1676 = vmatmul.mubr.bf16.gmra.mxu1 %v745_v7 }
 0x1e4   : > { %1685 = vmatprep.mubr.bf16.mxu1 %v748_v25 }
 0x1eb   : > { %1686 = vmatmul.mubr.bf16.gmra.mxu1 %v747_v28 }
 0x233   : > { %v1391_v1 = vpop.f32.mrf.mxu1  ;;  %v1504_v3 = vpop.f32.mrf.mxu0 }
 0x234   : > { %v1392_v21 = vadd.f32 %v1391_v1, %v2982_v24  ;;  %v1505_v23 = vadd.f32 %v1504_v3, %v2985_v26 }
 0x235   : > { %v1393_v52 = vpop.f32.mrf.mxu1  ;;  %v1506_v30 = vpop.f32.mrf.mxu0 }
 0x236   : > { %v1696_v31 = vmax.f32 %v1392_v21, 0.0  ;;  %v1698_v32 = vmax.f32 %v1505_v23, 0.0  ;;  %v1394_v33 = vadd.f32 %v1393_v52, %v2991_v42  ;;  %v1507_v34 = vadd.f32 %v1506_v30, %v2994_v44 }
 0x237   : > { %v1395_v35 = vpop.f32.mrf.mxu1  ;;  %v1508_v51 = vpop.f32.mrf.mxu0 }
 0x238   : > { %1792 = vst [vmem:[%s3000_s17] sm:$0xff] %v1696_v31  ;;  %1794 = vst [vmem:[%s3000_s17 + $0x10] sm:$0xff] %v1698_v32  ;;  %v1697_v36 = vmax.f32 %v1394_v33, 0.0  ;;  %v1699_v37 = vmax.f32 %v1507_v34, 0.0  ;;  %v1396_v38 = vadd.f32 %v1395_v35, %v2982_v24  ;;  %v1509_v39 = vadd.f32 %v1508_v51, %v2985_v26 }
 0x239   : > { %v1397_v40 = vpop.f32.mrf.mxu1  ;;  %v1510_v41 = vpop.f32.mrf.mxu0 }
 0x23a   : > { %1793 = vst [vmem:[%s3000_s17 + $0x8] sm:$0xff] %v1697_v36  ;;  %1795 = vst [vmem:[%s3000_s17 + $0x18] sm:$0xff] %v1699_v37  ;;  %v1702_v43 = vmax.f32 %v1396_v38, 0.0  ;;  %v1704_v45 = vmax.f32 %v1509_v39, 0.0  ;;  %v1398_v46 = vadd.f32 %v1397_v40, %v2991_v42  ;;  %v1511_v47 = vadd.f32 %v1510_v41, %v2994_v44 }
 0x23b   : > { %v1401_v48 = vpop.f32.mrf.mxu1  ;;  %v1514_v49 = vpop.f32.mrf.mxu0 }
 0x23c   : > { %1798 = vst [vmem:[%s3000_s17 + $0x30] sm:$0xff] %v1702_v43  ;;  %1800 = vst [vmem:[%s3000_s17 + $0x40] sm:$0xff] %v1704_v45  ;;  %v1703_v53 = vmax.f32 %v1398_v46, 0.0  ;;  %v1705_v54 = vmax.f32 %v1511_v47, 0.0  ;;  %v1402_v57 = vadd.f32 %v1401_v48, %v2982_v24  ;;  %v1515_v58 = vadd.f32 %v1514_v49, %v2985_v26 }
 0x23d   : > { %v1403_v59 = vpop.f32.mrf.mxu1  ;;  %v1516_v60 = vpop.f32.mrf.mxu0 }
 0x23e   : > { %1799 = vst [vmem:[%s3000_s17 + $0x38] sm:$0xff] %v1703_v53  ;;  %1801 = vst [vmem:[%s3000_s17 + $0x48] sm:$0xff] %v1705_v54  ;;  %v1708_v61 = vmax.f32 %v1402_v57, 0.0  ;;  %v1710_v62 = vmax.f32 %v1515_v58, 0.0  ;;  %v1404_v63 = vadd.f32 %v1403_v59, %v2991_v42  ;;  %v1517_v0 = vadd.f32 %v1516_v60, %v2994_v44 }
 0x23f   : > { %v1405_v2 = vpop.f32.mrf.mxu1  ;;  %v1518_v4 = vpop.f32.mrf.mxu0 }
 0x240   : > { %1804 = vst [vmem:[%s3000_s17 + $0x60] sm:$0xff] %v1708_v61  ;;  %1806 = vst [vmem:[%s3000_s17 + $0x70] sm:$0xff] %v1710_v62  ;;  %v1709_v5 = vmax.f32 %v1404_v63, 0.0  ;;  %v1711_v7 = vmax.f32 %v1517_v0, 0.0  ;;  %v1406_v9 = vadd.f32 %v1405_v2, %v2982_v24  ;;  %v1519_v10 = vadd.f32 %v1518_v4, %v2985_v26 }
 0x241   : > { %v1407_v11 = vpop.f32.mrf.mxu1  ;;  %v1520_v12 = vpop.f32.mrf.mxu0 }
 0x242   : > { %1805 = vst [vmem:[%s3000_s17 + $0x68] sm:$0xff] %v1709_v5  ;;  %1807 = vst [vmem:[%s3000_s17 + $0x78] sm:$0xff] %v1711_v7  ;;  %v1714_v13 = vmax.f32 %v1406_v9, 0.0  ;;  %v1716_v14 = vmax.f32 %v1519_v10, 0.0  ;;  %v1408_v15 = vadd.f32 %v1407_v11, %v2991_v42  ;;  %v1521_v16 = vadd.f32 %v1520_v12, %v2994_v44 }
 0x243   : > { %v1411_v17 = vpop.f32.mrf.mxu1  ;;  %v1524_v18 = vpop.f32.mrf.mxu0 }
 0x244   : > { %1810 = vst [vmem:[%s3000_s17 + $0x90] sm:$0xff] %v1714_v13  ;;  %1812 = vst [vmem:[%s3000_s17 + $0xa0] sm:$0xff] %v1716_v14  ;;  %v1715_v19 = vmax.f32 %v1408_v15, 0.0  ;;  %v1717_v20 = vmax.f32 %v1521_v16, 0.0  ;;  %v1412_v22 = vadd.f32 %v1411_v17, %v2982_v24  ;;  %v1525_v25 = vadd.f32 %v1524_v18, %v2985_v26 }
 0x245   : > { %v1413_v27 = vpop.f32.mrf.mxu1  ;;  %v1526_v28 = vpop.f32.mrf.mxu0 }
 0x246   : > { %1811 = vst [vmem:[%s3000_s17 + $0x98] sm:$0xff] %v1715_v19  ;;  %1813 = vst [vmem:[%s3000_s17 + $0xa8] sm:$0xff] %v1717_v20  ;;  %v1720_v29 = vmax.f32 %v1412_v22, 0.0  ;;  %v1722_v55 = vmax.f32 %v1525_v25, 0.0  ;;  %v1414_v56 = vadd.f32 %v1413_v27, %v2991_v42  ;;  %v1527_v8 = vadd.f32 %v1526_v28, %v2994_v44 }
 0x247   : > { %v1415_v1 = vpop.f32.mrf.mxu1  ;;  %v1528_v3 = vpop.f32.mrf.mxu0 }
 0x248   : > { %1816 = vst [vmem:[%s3000_s17 + $0xc0] sm:$0xff] %v1720_v29  ;;  %1818 = vst [vmem:[%s3000_s17 + $0xd0] sm:$0xff] %v1722_v55  ;;  %v1721_v21 = vmax.f32 %v1414_v56, 0.0  ;;  %v1723_v23 = vmax.f32 %v1527_v8, 0.0  ;;  %v1416_v52 = vadd.f32 %v1415_v1, %v2982_v24  ;;  %v1529_v30 = vadd.f32 %v1528_v3, %v2985_v26 }
 0x249   : > { %v1417_v31 = vpop.f32.mrf.mxu1  ;;  %v1530_v32 = vpop.f32.mrf.mxu0 }
 0x24a   : > { %1817 = vst [vmem:[%s3000_s17 + $0xc8] sm:$0xff] %v1721_v21  ;;  %1819 = vst [vmem:[%s3000_s17 + $0xd8] sm:$0xff] %v1723_v23  ;;  %v1726_v33 = vmax.f32 %v1416_v52, 0.0  ;;  %v1728_v34 = vmax.f32 %v1529_v30, 0.0  ;;  %v1418_v35 = vadd.f32 %v1417_v31, %v2991_v42  ;;  %v1531_v51 = vadd.f32 %v1530_v32, %v2994_v44 }
 0x24b   : > { %v1421_v36 = vpop.f32.mrf.mxu1  ;;  %v1534_v37 = vpop.f32.mrf.mxu0 }
 0x24c   : > { %1822 = vst [vmem:[%s3000_s17 + $0xf0] sm:$0xff] %v1726_v33  ;;  %1824 = vst [vmem:[%s3000_s17 + $0x100] sm:$0xff] %v1728_v34  ;;  %v1727_v38 = vmax.f32 %v1418_v35, 0.0  ;;  %v1729_v39 = vmax.f32 %v1531_v51, 0.0  ;;  %v1422_v40 = vadd.f32 %v1421_v36, %v2982_v24  ;;  %v1535_v41 = vadd.f32 %v1534_v37, %v2985_v26 }
 0x24d   : > { %v1423_v43 = vpop.f32.mrf.mxu1  ;;  %v1536_v45 = vpop.f32.mrf.mxu0 }
 0x24e   : > { %1823 = vst [vmem:[%s3000_s17 + $0xf8] sm:$0xff] %v1727_v38  ;;  %1825 = vst [vmem:[%s3000_s17 + $0x108] sm:$0xff] %v1729_v39  ;;  %v1732_v46 = vmax.f32 %v1422_v40, 0.0  ;;  %v1734_v47 = vmax.f32 %v1535_v41, 0.0  ;;  %v1424_v48 = vadd.f32 %v1423_v43, %v2991_v42  ;;  %v1537_v49 = vadd.f32 %v1536_v45, %v2994_v44 }
 0x24f   : > { %v1425_v53 = vpop.f32.mrf.mxu1  ;;  %v1538_v54 = vpop.f32.mrf.mxu0 }
 0x250   : > { %1828 = vst [vmem:[%s3000_s17 + $0x120] sm:$0xff] %v1732_v46  ;;  %1830 = vst [vmem:[%s3000_s17 + $0x130] sm:$0xff] %v1734_v47  ;;  %v1733_v57 = vmax.f32 %v1424_v48, 0.0  ;;  %v1735_v58 = vmax.f32 %v1537_v49, 0.0  ;;  %v1426_v59 = vadd.f32 %v1425_v53, %v2982_v24  ;;  %v1539_v60 = vadd.f32 %v1538_v54, %v2985_v26 }
 0x251   : > { %v1427_v61 = vpop.f32.mrf.mxu1  ;;  %v1540_v62 = vpop.f32.mrf.mxu0 }
 0x252   : > { %1829 = vst [vmem:[%s3000_s17 + $0x128] sm:$0xff] %v1733_v57  ;;  %1831 = vst [vmem:[%s3000_s17 + $0x138] sm:$0xff] %v1735_v58  ;;  %v1738_v63 = vmax.f32 %v1426_v59, 0.0  ;;  %v1740_v0 = vmax.f32 %v1539_v60, 0.0  ;;  %v1428_v2 = vadd.f32 %v1427_v61, %v2991_v42  ;;  %v1541_v4 = vadd.f32 %v1540_v62, %v2994_v44 }
 0x253   : > { %v1431_v5 = vpop.f32.mrf.mxu1  ;;  %v1544_v7 = vpop.f32.mrf.mxu0 }
 0x254   : > { %1834 = vst [vmem:[%s3000_s17 + $0x150] sm:$0xff] %v1738_v63  ;;  %1836 = vst [vmem:[%s3000_s17 + $0x160] sm:$0xff] %v1740_v0  ;;  %v1739_v9 = vmax.f32 %v1428_v2, 0.0  ;;  %v1741_v10 = vmax.f32 %v1541_v4, 0.0  ;;  %v1432_v11 = vadd.f32 %v1431_v5, %v2982_v24  ;;  %v1545_v12 = vadd.f32 %v1544_v7, %v2985_v26 }
 0x255   : > { %v1433_v13 = vpop.f32.mrf.mxu1  ;;  %v1546_v14 = vpop.f32.mrf.mxu0 }
 0x256   : > { %1835 = vst [vmem:[%s3000_s17 + $0x158] sm:$0xff] %v1739_v9  ;;  %1837 = vst [vmem:[%s3000_s17 + $0x168] sm:$0xff] %v1741_v10  ;;  %v1744_v15 = vmax.f32 %v1432_v11, 0.0  ;;  %v1746_v16 = vmax.f32 %v1545_v12, 0.0  ;;  %v1434_v17 = vadd.f32 %v1433_v13, %v2991_v42  ;;  %v1547_v18 = vadd.f32 %v1546_v14, %v2994_v44 }
 0x257   : > { %v1435_v19 = vpop.f32.mrf.mxu1  ;;  %v1548_v20 = vpop.f32.mrf.mxu0 }
 0x258   : > { %1840 = vst [vmem:[%s3000_s17 + $0x180] sm:$0xff] %v1744_v15  ;;  %1842 = vst [vmem:[%s3000_s17 + $0x190] sm:$0xff] %v1746_v16  ;;  %v1745_v22 = vmax.f32 %v1434_v17, 0.0  ;;  %v1747_v25 = vmax.f32 %v1547_v18, 0.0  ;;  %v1436_v27 = vadd.f32 %v1435_v19, %v2982_v24  ;;  %v1549_v28 = vadd.f32 %v1548_v20, %v2985_v26 }
 0x259   : > { %v1437_v29 = vpop.f32.mrf.mxu1  ;;  %v1550_v55 = vpop.f32.mrf.mxu0 }
 0x25a   : > { %1841 = vst [vmem:[%s3000_s17 + $0x188] sm:$0xff] %v1745_v22  ;;  %1843 = vst [vmem:[%s3000_s17 + $0x198] sm:$0xff] %v1747_v25  ;;  %v1750_v56 = vmax.f32 %v1436_v27, 0.0  ;;  %v1752_v8 = vmax.f32 %v1549_v28, 0.0  ;;  %v1438_v1 = vadd.f32 %v1437_v29, %v2991_v42  ;;  %v1551_v3 = vadd.f32 %v1550_v55, %v2994_v44 }
 0x25b   : > { %v1441_v21 = vpop.f32.mrf.mxu1  ;;  %v1554_v23 = vpop.f32.mrf.mxu0  ;;  %v865_v27 = vsub.s32 4, %v2868_v50 }
 0x25c   : > { %1846 = vst [vmem:[%s3000_s17 + $0x1b0] sm:$0xff] %v1750_v56  ;;  %1848 = vst [vmem:[%s3000_s17 + $0x1c0] sm:$0xff] %v1752_v8  ;;  %v1751_v52 = vmax.f32 %v1438_v1, 0.0  ;;  %v1753_v30 = vmax.f32 %v1551_v3, 0.0  ;;  %v1442_v31 = vadd.f32 %v1441_v21, %v2982_v24  ;;  %v1555_v32 = vadd.f32 %v1554_v23, %v2985_v26 }
 0x25d   : > { %v1443_v33 = vpop.f32.mrf.mxu1  ;;  %v1556_v34 = vpop.f32.mrf.mxu0  ;;  %v869_v3 = vsub.s32 5, %v2868_v50 }
 0x25e   : > { %1847 = vst [vmem:[%s3000_s17 + $0x1b8] sm:$0xff] %v1751_v52  ;;  %1849 = vst [vmem:[%s3000_s17 + $0x1c8] sm:$0xff] %v1753_v30  ;;  %v1756_v35 = vmax.f32 %v1442_v31, 0.0  ;;  %v1758_v51 = vmax.f32 %v1555_v32, 0.0  ;;  %v1444_v36 = vadd.f32 %v1443_v33, %v2991_v42  ;;  %v1557_v37 = vadd.f32 %v1556_v34, %v2994_v44 }
 0x25f   : > { %v1445_v38 = vpop.f32.mrf.mxu1  ;;  %v1558_v39 = vpop.f32.mrf.mxu0  ;;  %v3117_v33 = vrot.slane %v2976_v6, %v865_v27 }
 0x260   : > { %1852 = vst [vmem:[%s3000_s17 + $0x1e0] sm:$0xff] %v1756_v35  ;;  %1854 = vst [vmem:[%s3000_s17 + $0x1f0] sm:$0xff] %v1758_v51  ;;  %v1757_v40 = vmax.f32 %v1444_v36, 0.0  ;;  %v1759_v41 = vmax.f32 %v1557_v37, 0.0  ;;  %v1446_v43 = vadd.f32 %v1445_v38, %v2982_v24  ;;  %v1559_v45 = vadd.f32 %v1558_v39, %v2985_v26 }
 0x261   : > { %v1447_v46 = vpop.f32.mrf.mxu1  ;;  %v1560_v47 = vpop.f32.mrf.mxu0  ;;  %v3124_v38 = vrot.slane %v2976_v6, %v869_v3 }
 0x262   : > { %1853 = vst [vmem:[%s3000_s17 + $0x1e8] sm:$0xff] %v1757_v40  ;;  %1855 = vst [vmem:[%s3000_s17 + $0x1f8] sm:$0xff] %v1759_v41  ;;  %v1762_v48 = vmax.f32 %v1446_v43, 0.0  ;;  %v1764_v49 = vmax.f32 %v1559_v45, 0.0  ;;  %v1448_v53 = vadd.f32 %v1447_v46, %v2991_v42  ;;  %v1561_v54 = vadd.f32 %v1560_v47, %v2994_v44 }
 0x263   : > { %v1451_v57 = vpop.f32.mrf.mxu1  ;;  %v1564_v58 = vpop.f32.mrf.mxu0 }
 0x264   : > { %1858 = vst [vmem:[%s3000_s17 + $0x210] sm:$0xff] %v1762_v48  ;;  %1860 = vst [vmem:[%s3000_s17 + $0x220] sm:$0xff] %v1764_v49  ;;  %v1763_v59 = vmax.f32 %v1448_v53, 0.0  ;;  %v1765_v60 = vmax.f32 %v1561_v54, 0.0  ;;  %v1452_v61 = vadd.f32 %v1451_v57, %v2982_v24  ;;  %v1565_v62 = vadd.f32 %v1564_v58, %v2985_v26 }
 0x265   : > { %v1453_v63 = vpop.f32.mrf.mxu1  ;;  %v1566_v0 = vpop.f32.mrf.mxu0 }
 0x266   : > { %1859 = vst [vmem:[%s3000_s17 + $0x218] sm:$0xff] %v1763_v59  ;;  %1861 = vst [vmem:[%s3000_s17 + $0x228] sm:$0xff] %v1765_v60  ;;  %v1768_v2 = vmax.f32 %v1452_v61, 0.0  ;;  %v1770_v4 = vmax.f32 %v1565_v62, 0.0  ;;  %v1454_v5 = vadd.f32 %v1453_v63, %v2991_v42  ;;  %v1567_v7 = vadd.f32 %v1566_v0, %v2994_v44 }
 0x267   : > { %v1455_v9 = vpop.f32.mrf.mxu1  ;;  %v1568_v10 = vpop.f32.mrf.mxu0 }
 0x268   : > { %1864 = vst [vmem:[%s3000_s17 + $0x240] sm:$0xff] %v1768_v2  ;;  %1866 = vst [vmem:[%s3000_s17 + $0x250] sm:$0xff] %v1770_v4  ;;  %v1769_v11 = vmax.f32 %v1454_v5, 0.0  ;;  %v1771_v12 = vmax.f32 %v1567_v7, 0.0  ;;  %v1456_v13 = vadd.f32 %v1455_v9, %v2982_v24  ;;  %v1569_v14 = vadd.f32 %v1568_v10, %v2985_v26 }
 0x269   : > { %v1457_v15 = vpop.f32.mrf.mxu1  ;;  %v1570_v16 = vpop.f32.mrf.mxu0 }
 0x26a   : > { %1865 = vst [vmem:[%s3000_s17 + $0x248] sm:$0xff] %v1769_v11  ;;  %1867 = vst [vmem:[%s3000_s17 + $0x258] sm:$0xff] %v1771_v12  ;;  %v1774_v17 = vmax.f32 %v1456_v13, 0.0  ;;  %v1776_v18 = vmax.f32 %v1569_v14, 0.0  ;;  %v1458_v19 = vadd.f32 %v1457_v15, %v2991_v42  ;;  %v1571_v20 = vadd.f32 %v1570_v16, %v2994_v44 }
 0x26b   : > { %v1461_v22 = vpop.f32.mrf.mxu1  ;;  %v1574_v25 = vpop.f32.mrf.mxu0 }
 0x26c   : > { %1870 = vst [vmem:[%s3000_s17 + $0x270] sm:$0xff] %v1774_v17  ;;  %1872 = vst [vmem:[%s3000_s17 + $0x280] sm:$0xff] %v1776_v18  ;;  %v1775_v28 = vmax.f32 %v1458_v19, 0.0  ;;  %v1777_v29 = vmax.f32 %v1571_v20, 0.0  ;;  %v1462_v55 = vadd.f32 %v1461_v22, %v2982_v24  ;;  %v1575_v56 = vadd.f32 %v1574_v25, %v2985_v26 }
 0x26d   : > { %v1463_v8 = vpop.f32.mrf.mxu1  ;;  %v1576_v1 = vpop.f32.mrf.mxu0 }
 0x26e   : > { %1871 = vst [vmem:[%s3000_s17 + $0x278] sm:$0xff] %v1775_v28  ;;  %1873 = vst [vmem:[%s3000_s17 + $0x288] sm:$0xff] %v1777_v29  ;;  %v1780_v21 = vmax.f32 %v1462_v55, 0.0  ;;  %v1782_v23 = vmax.f32 %v1575_v56, 0.0  ;;  %v1464_v52 = vadd.f32 %v1463_v8, %v2991_v42  ;;  %v1577_v30 = vadd.f32 %v1576_v1, %v2994_v44 }
 0x26f   : > { %v1465_v31 = vpop.f32.mrf.mxu1  ;;  %v1578_v32 = vpop.f32.mrf.mxu0 }
 0x270   : > { %1876 = vst [vmem:[%s3000_s17 + $0x2a0] sm:$0xff] %v1780_v21  ;;  %1878 = vst [vmem:[%s3000_s17 + $0x2b0] sm:$0xff] %v1782_v23  ;;  %v1781_v50 = vmax.f32 %v1464_v52, 0.0  ;;  %v1783_v34 = vmax.f32 %v1577_v30, 0.0  ;;  %v1466_v35 = vadd.f32 %v1465_v31, %v2982_v24  ;;  %v1579_v51 = vadd.f32 %v1578_v32, %v2985_v26 }
 0x271   : > { %v1467_v36 = vpop.f32.mrf.mxu1  ;;  %v1580_v37 = vpop.f32.mrf.mxu0 }
 0x272   : > { %1877 = vst [vmem:[%s3000_s17 + $0x2a8] sm:$0xff] %v1781_v50  ;;  %1879 = vst [vmem:[%s3000_s17 + $0x2b8] sm:$0xff] %v1783_v34  ;;  %v1786_v39 = vmax.f32 %v1466_v35, 0.0  ;;  %v1788_v40 = vmax.f32 %v1579_v51, 0.0  ;;  %v1468_v41 = vadd.f32 %v1467_v36, %v2991_v42  ;;  %v1581_v43 = vadd.f32 %v1580_v37, %v2994_v44 }
 0x273   : > { %v1617_v45 = vpop.f32.mrf.mxu1 }
 0x274   : > { %1882 = vst [vmem:[%s3000_s17 + $0x2d0] sm:$0xff] %v1786_v39  ;;  %1884 = vst [vmem:[%s3000_s17 + $0x2e0] sm:$0xff] %v1788_v40  ;;  %v1787_v24 = vmax.f32 %v1468_v41, 0.0  ;;  %v1789_v26 = vmax.f32 %v1581_v43, 0.0  ;;  %v1618_v46 = vadd.f32 %v1617_v45, %v3117_v33 }
 0x275   : > { %v1619_v6 = vpop.f32.mrf.mxu1 }
 0x276   : > { %1883 = vst [vmem:[%s3000_s17 + $0x2d8] sm:$0xff] %v1787_v24  ;;  %1885 = vst [vmem:[%s3000_s17 + $0x2e8] sm:$0xff] %v1789_v26  ;;  %v1700_v47 = vmax.f32 %v1618_v46, 0.0  ;;  %v1620_v48 = vadd.f32 %v1619_v6, %v3124_v38 }
 0x277   : > { %v1621_v49 = vpop.f32.mrf.mxu1 }
 0x278   : > { %1796 = vst [vmem:[%s3000_s17 + $0x20] sm:$0xff] %v1700_v47  ;;  %v1701_v42 = vmax.f32 %v1620_v48, 0.0  ;;  %v1622_v44 = vadd.f32 %v1621_v49, %v3117_v33 }
 0x279   : > { %v1623_v53 = vpop.f32.mrf.mxu1 }
 0x27a   : > { %1797 = vst [vmem:[%s3000_s17 + $0x28] sm:$0xff] %v1701_v42  ;;  %v1706_v54 = vmax.f32 %v1622_v44, 0.0  ;;  %v1624_v57 = vadd.f32 %v1623_v53, %v3124_v38 }
 0x27b   : > { %v1627_v58 = vpop.f32.mrf.mxu1 }
 0x27c   : > { %1802 = vst [vmem:[%s3000_s17 + $0x50] sm:$0xff] %v1706_v54  ;;  %v1707_v59 = vmax.f32 %v1624_v57, 0.0  ;;  %v1628_v60 = vadd.f32 %v1627_v58, %v3117_v33 }
 0x27d   : > { %v1629_v61 = vpop.f32.mrf.mxu1 }
 0x27e   : > { %1803 = vst [vmem:[%s3000_s17 + $0x58] sm:$0xff] %v1707_v59  ;;  %v1712_v62 = vmax.f32 %v1628_v60, 0.0  ;;  %v1630_v63 = vadd.f32 %v1629_v61, %v3124_v38 }
 0x27f   : > { %v1631_v0 = vpop.f32.mrf.mxu1 }
 0x280   : > { %1808 = vst [vmem:[%s3000_s17 + $0x80] sm:$0xff] %v1712_v62  ;;  %v1713_v2 = vmax.f32 %v1630_v63, 0.0  ;;  %v1632_v4 = vadd.f32 %v1631_v0, %v3117_v33 }
 0x281   : > { %v1633_v5 = vpop.f32.mrf.mxu1 }
 0x282   : > { %1809 = vst [vmem:[%s3000_s17 + $0x88] sm:$0xff] %v1713_v2  ;;  %v1718_v7 = vmax.f32 %v1632_v4, 0.0  ;;  %v1634_v9 = vadd.f32 %v1633_v5, %v3124_v38 }
 0x283   : > { %v1637_v10 = vpop.f32.mrf.mxu1 }
 0x284   : > { %1814 = vst [vmem:[%s3000_s17 + $0xb0] sm:$0xff] %v1718_v7  ;;  %v1719_v11 = vmax.f32 %v1634_v9, 0.0  ;;  %v1638_v12 = vadd.f32 %v1637_v10, %v3117_v33 }
 0x285   : > { %v1639_v13 = vpop.f32.mrf.mxu1 }
 0x286   : > { %1815 = vst [vmem:[%s3000_s17 + $0xb8] sm:$0xff] %v1719_v11  ;;  %v1724_v14 = vmax.f32 %v1638_v12, 0.0  ;;  %v1640_v15 = vadd.f32 %v1639_v13, %v3124_v38 }
 0x287   : > { %v1641_v16 = vpop.f32.mrf.mxu1 }
 0x288   : > { %1820 = vst [vmem:[%s3000_s17 + $0xe0] sm:$0xff] %v1724_v14  ;;  %v1725_v17 = vmax.f32 %v1640_v15, 0.0  ;;  %v1642_v18 = vadd.f32 %v1641_v16, %v3117_v33 }
 0x289   : > { %v1643_v19 = vpop.f32.mrf.mxu1 }
 0x28a   : > { %1821 = vst [vmem:[%s3000_s17 + $0xe8] sm:$0xff] %v1725_v17  ;;  %v1730_v20 = vmax.f32 %v1642_v18, 0.0  ;;  %v1644_v22 = vadd.f32 %v1643_v19, %v3124_v38 }
 0x28b   : > { %v1647_v25 = vpop.f32.mrf.mxu1 }
 0x28c   : > { %1826 = vst [vmem:[%s3000_s17 + $0x110] sm:$0xff] %v1730_v20  ;;  %v1731_v27 = vmax.f32 %v1644_v22, 0.0  ;;  %v1648_v28 = vadd.f32 %v1647_v25, %v3117_v33 }
 0x28d   : > { %v1649_v29 = vpop.f32.mrf.mxu1 }
 0x28e   : > { %1827 = vst [vmem:[%s3000_s17 + $0x118] sm:$0xff] %v1731_v27  ;;  %v1736_v55 = vmax.f32 %v1648_v28, 0.0  ;;  %v1650_v56 = vadd.f32 %v1649_v29, %v3124_v38 }
 0x28f   : > { %v1651_v8 = vpop.f32.mrf.mxu1 }
 0x290   : > { %1832 = vst [vmem:[%s3000_s17 + $0x140] sm:$0xff] %v1736_v55  ;;  %v1737_v1 = vmax.f32 %v1650_v56, 0.0  ;;  %v1652_v3 = vadd.f32 %v1651_v8, %v3117_v33 }
 0x291   : > { %v1653_v21 = vpop.f32.mrf.mxu1 }
 0x292   : > { %1833 = vst [vmem:[%s3000_s17 + $0x148] sm:$0xff] %v1737_v1  ;;  %v1742_v23 = vmax.f32 %v1652_v3, 0.0  ;;  %v1654_v52 = vadd.f32 %v1653_v21, %v3124_v38 }
 0x293   : > { %v1657_v30 = vpop.f32.mrf.mxu1 }
 0x294   : > { %1838 = vst [vmem:[%s3000_s17 + $0x170] sm:$0xff] %v1742_v23  ;;  %v1743_v31 = vmax.f32 %v1654_v52, 0.0  ;;  %v1658_v32 = vadd.f32 %v1657_v30, %v3117_v33 }
 0x295   : > { %v1659_v50 = vpop.f32.mrf.mxu1 }
 0x296   : > { %1839 = vst [vmem:[%s3000_s17 + $0x178] sm:$0xff] %v1743_v31  ;;  %v1748_v34 = vmax.f32 %v1658_v32, 0.0  ;;  %v1660_v35 = vadd.f32 %v1659_v50, %v3124_v38 }
 0x297   : > { %v1661_v51 = vpop.f32.mrf.mxu1 }
 0x298   : > { %1844 = vst [vmem:[%s3000_s17 + $0x1a0] sm:$0xff] %v1748_v34  ;;  %v1749_v36 = vmax.f32 %v1660_v35, 0.0  ;;  %v1662_v37 = vadd.f32 %v1661_v51, %v3117_v33 }
 0x299   : > { %v1663_v39 = vpop.f32.mrf.mxu1 }
 0x29a   : > { %1845 = vst [vmem:[%s3000_s17 + $0x1a8] sm:$0xff] %v1749_v36  ;;  %v1754_v40 = vmax.f32 %v1662_v37, 0.0  ;;  %v1664_v41 = vadd.f32 %v1663_v39, %v3124_v38 }
 0x29b   : > { %v1667_v43 = vpop.f32.mrf.mxu1 }
 0x29c   : > { %1850 = vst [vmem:[%s3000_s17 + $0x1d0] sm:$0xff] %v1754_v40  ;;  %v1755_v45 = vmax.f32 %v1664_v41, 0.0  ;;  %v1668_v24 = vadd.f32 %v1667_v43, %v3117_v33 }
 0x29d   : > { %v1669_v26 = vpop.f32.mrf.mxu1 }
 0x29e   : > { %1851 = vst [vmem:[%s3000_s17 + $0x1d8] sm:$0xff] %v1755_v45  ;;  %v1760_v46 = vmax.f32 %v1668_v24, 0.0  ;;  %v1670_v6 = vadd.f32 %v1669_v26, %v3124_v38 }
 0x29f   : > { %v1671_v47 = vpop.f32.mrf.mxu1 }
 0x2a0   : > { %1856 = vst [vmem:[%s3000_s17 + $0x200] sm:$0xff] %v1760_v46  ;;  %v1761_v48 = vmax.f32 %v1670_v6, 0.0  ;;  %v1672_v49 = vadd.f32 %v1671_v47, %v3117_v33 }
 0x2a1   : > { %v1673_v42 = vpop.f32.mrf.mxu1 }
 0x2a2   : > { %1857 = vst [vmem:[%s3000_s17 + $0x208] sm:$0xff] %v1761_v48  ;;  %v1766_v44 = vmax.f32 %v1672_v49, 0.0  ;;  %v1674_v53 = vadd.f32 %v1673_v42, %v3124_v38 }
 0x2a3   : > { %v1677_v54 = vpop.f32.mrf.mxu1 }
 0x2a4   : > { %1862 = vst [vmem:[%s3000_s17 + $0x230] sm:$0xff] %v1766_v44  ;;  %v1767_v57 = vmax.f32 %v1674_v53, 0.0  ;;  %v1678_v58 = vadd.f32 %v1677_v54, %v3117_v33 }
 0x2a5   : > { %v1679_v59 = vpop.f32.mrf.mxu1 }
 0x2a6   : > { %1863 = vst [vmem:[%s3000_s17 + $0x238] sm:$0xff] %v1767_v57  ;;  %v1772_v60 = vmax.f32 %v1678_v58, 0.0  ;;  %v1680_v61 = vadd.f32 %v1679_v59, %v3124_v38 }
 0x2a7   : > { %v1681_v62 = vpop.f32.mrf.mxu1 }
 0x2a8   : > { %1868 = vst [vmem:[%s3000_s17 + $0x260] sm:$0xff] %v1772_v60  ;;  %v1773_v63 = vmax.f32 %v1680_v61, 0.0  ;;  %v1682_v0 = vadd.f32 %v1681_v62, %v3117_v33 }
 0x2a9   : > { %v1683_v2 = vpop.f32.mrf.mxu1 }
 0x2aa   : > { %1869 = vst [vmem:[%s3000_s17 + $0x268] sm:$0xff] %v1773_v63  ;;  %v1778_v4 = vmax.f32 %v1682_v0, 0.0  ;;  %v1684_v5 = vadd.f32 %v1683_v2, %v3124_v38 }
 0x2ab   : > { %v1687_v7 = vpop.f32.mrf.mxu1 }
 0x2ac   : > { %1874 = vst [vmem:[%s3000_s17 + $0x290] sm:$0xff] %v1778_v4  ;;  %v1779_v9 = vmax.f32 %v1684_v5, 0.0  ;;  %v1688_v10 = vadd.f32 %v1687_v7, %v3117_v33 }
 0x2ad   : > { %v1689_v11 = vpop.f32.mrf.mxu1 }
 0x2ae   : > { %1875 = vst [vmem:[%s3000_s17 + $0x298] sm:$0xff] %v1779_v9  ;;  %v1784_v12 = vmax.f32 %v1688_v10, 0.0  ;;  %v1690_v13 = vadd.f32 %v1689_v11, %v3124_v38 }
 0x2af   : > { %v1691_v14 = vpop.f32.mrf.mxu1 }
 0x2b0   : > { %1880 = vst [vmem:[%s3000_s17 + $0x2c0] sm:$0xff] %v1784_v12  ;;  %v1785_v15 = vmax.f32 %v1690_v13, 0.0  ;;  %v1692_v16 = vadd.f32 %v1691_v14, %v3117_v33 }
 0x2b1   : > { %v1693_v17 = vpop.f32.mrf.mxu1 }
 0x2b2   : > { %1881 = vst [vmem:[%s3000_s17 + $0x2c8] sm:$0xff] %v1785_v15  ;;  %v1790_v18 = vmax.f32 %v1692_v16, 0.0  ;;  %v1694_v19 = vadd.f32 %v1693_v17, %v3124_v38 }
 0x2b4   : > { %1886 = vst [vmem:[%s3000_s17 + $0x2f0] sm:$0xff] %v1790_v18  ;;  %v1791_v20 = vmax.f32 %v1694_v19, 0.0 }
 0x2b6   : > { %1887 = vst [vmem:[%s3000_s17 + $0x2f8] sm:$0xff] %v1791_v20 }
 0x2b7   : > { %2591 = shalt.err (!%p2588_p13)
}
 0x2b8   : > { %s2592_s8 = scalar_lea.hbm %s3201_s29, 12288  ;;  %s2596_s26 = scalar_lea.hbm %s3253_s5, 24576 }
 0x2b9   : > { %p2593_p9 = scmp.ne.s32.totalorder %s3201_s29, %s2592_s8  ;;  %p2597_p11 = scmp.lt.s32.totalorder %s3201_s29, %s3253_s5 }
 0x2ba   : > { %p2598_p0 = scmp.lt.s32.totalorder %s2596_s26, %s2592_s8 }
 0x2bb   : > { %p2594_p8 = pnand %p2593_p9, %p3273_p2 }
 0x2bc   : > { %p2599_p3 = por %p2598_p0, %p2597_p11 }
 0x2bd   : > { %p2595_p10 = pneg %p2594_p8 }
 0x2bf   : > { %p2600_p1 = pnand %p2599_p3, %p2595_p10 }
 0x2c1   : > { %2603 = shalt.err (!%p2600_p1)
}
 0x2c2   : > { %s2661_s27 = smov 768   ;;  %s2662_s30 = smov 48  }
 0x2c3   : > { %2187 = dma.vmem_to_hbm [thread:$0]  (%p3273_p2), %s3203_s28, 12288, %s3201_s29, %s1889_s22, %s2661_s27, %s2661_s27, %s2662_s30  }
 0x2c4 PF: > { %s1918_s16 = sand.u32 1, %s2638_s18   ;;  %p3274_p4 = scmp.ne.s32.totalorder %s3260_s25, 0 }
 0x2c5   : > { %p3275_p6 = scmp.ge.s32.totalorder %s2650_s21, 2  ;;  %s1919_s23 = scalar_lea.sflag [#allocation4], %s1918_s16 }
 0x2c7   : > { %p2204_p12 = pnand %p3275_p6, %p3274_p4 }
 0x2c9   : > { %p2205_p5 = pneg %p2204_p12 }
 0x2cb   : > { %2633 = dma.done.wait (%p2205_p5), %s1919_s23, 12288  }
 0x2cc   : > { %2635 = vsyncadd (%p2205_p5), %s1919_s23, 4294955008  ;;  %p20_p7 = scmp.ge.s32.totalorder %s2776_s6, 4   ;;  %s3276_s18 = smov %s2642_s19 }
 0x2cd   : > { %s3277_s19 = smov %s2646_s20  ;;  %s3278_s20 = smov %s2786_s12 }
 0x2ce   : > { %s3279_s21 = smov %s2776_s6  ;;  %22 = sbr.rel (!%p20_p7) target bundleno = 7 (0x7), region = 97 }
 0x2d3   :  { %1924 = vsyncpa [#allocation3], 1 }
 0x2d4   :  { %1926 = vsyncpa [#allocation3 + $0x1], 1 }
 0x2d5   :  { %1927 = vsyncpa [#allocation6], 1 }
 0x2d6   :  { %1928 = vsyncpa [#allocation9], 1 }
 0x2d7   :  { %1929 = vsyncpa [#allocation4], 1 }
 0x2d8   :  { %1931 = vsyncpa [#allocation4 + $0x1], 1 }

</bundles_post_ra>
